<compile_context>
chip_gen: v7x
topology: tpu7x:2x2x1
jax: 0.10.0
libtpu: 0.0.40
codegen_flags: <defaults>
</compile_context>

<pallas_src>
import jax
import jax.numpy as jnp
from jax import lax
from jax.experimental import pallas as pl
from jax.experimental.pallas import tpu as pltpu


_TB = 8  # batch rows per grid step (fills 8 sublanes, amortizes grid overhead)


def _ae_loss_kernel(ae_ref, ind_ref, mask_ref, out_ref):
    # ae_ref:   (TB, NR, 128) f32   heatmap rows, 128 lanes per row
    # ind_ref:  (TB, OP)      i32   flat part indices into [0, h*w)
    # mask_ref: (TB, O, P)    f32
    # out_ref:  (TB, 2)       f32   lane0 = pull partial, lane1 = push partial
    TB, NR, L = ae_ref.shape
    _, O, P = mask_ref.shape
    OP = O * P

    idx = ind_ref[...]                       # (TB, OP) int32
    row = idx >> 7                           # which 128-wide row   (single shift)
    col = idx & 127                          # lane within the row  (single and)

    # ---- stage 1 (MXU): one-hot row selection --------------------------------
    row_iota = lax.broadcasted_iota(jnp.int32, (1, 1, NR), 2)
    onehot = (row[:, :, None] == row_iota).astype(jnp.float32)      # (TB, OP, NR)

    ae_vals = ae_ref[...]                                           # (TB, NR, L)
    ae_hi = ae_vals.astype(jnp.bfloat16).astype(jnp.float32)        # bf16-exact part
    ae_lo = ae_vals - ae_hi                                         # residual
    rows = (jnp.einsum("bon,bnl->bol", onehot, ae_hi,
                       preferred_element_type=jnp.float32)
            + jnp.einsum("bon,bnl->bol", onehot, ae_lo,
                         preferred_element_type=jnp.float32))       # (TB, OP, L)

    # ---- stage 2 (VPU): lane select within the candidate row -----------------
    lane_iota = lax.broadcasted_iota(jnp.int32, (1, 1, L), 2)
    hit = col[:, :, None] == lane_iota                              # (TB, OP, L)
    tag = jnp.where(hit, rows, 0.0).sum(axis=2).reshape(TB, O, P)   # (TB, O, P)

    # ---- pull / push (exact divides; tensors here are tiny) ------------------
    mask = mask_ref[...]                                            # (TB, O, P)
    mask_sum = mask.sum(axis=2)                                     # (TB, O)
    obj_mask = (mask_sum != 0.0).astype(jnp.float32)                # (TB, O)
    tag_mean = (tag * mask).sum(axis=2) / (mask_sum + 1e-4)         # (TB, O)
    obj_num = obj_mask.sum(axis=1, keepdims=True)                   # (TB, 1)

    pull_dist = (tag - tag_mean[:, :, None]) ** 2 * mask            # (TB, O, P)
    pull_sum = pull_dist.sum(axis=2).sum(axis=1, keepdims=True)     # (TB, 1)
    pull = pull_sum / (obj_num + 1e-4)

    push_m = jnp.maximum(0.0, 1.0 - jnp.abs(tag_mean[:, :, None]
                                            - tag_mean[:, None, :]))  # (TB, O, O)
    pair = obj_mask[:, :, None] * obj_mask[:, None, :]              # both valid
    push_sum = (push_m * pair).sum(axis=2).sum(axis=1, keepdims=True)
    push = (push_sum - obj_num) / (obj_num * (obj_num - 1.0) + 1e-4)

    out_ref[...] = jnp.concatenate([pull, push], axis=1)            # (TB, 2)


def ae_loss_pallas(ae, ind, ind_mask):
    """ae: [b,1,h,w] f32, ind: [b,O,P] int, ind_mask: [b,O,P] -> (pull, push)."""
    b, _, h, w = ae.shape
    _, O, P = ind.shape
    OP = O * P
    hw = h * w

    # rows of 128 lanes; round the row count up to a multiple of 8 (sublane tile)
    nr = (pl.cdiv(hw, 128) + 7) // 8 * 8
    hw_pad = nr * 128
    b_pad = ((b + _TB - 1) // _TB) * _TB
    g = b_pad // _TB

    ae_flat = ae.reshape(b, hw).astype(jnp.float32)
    if hw_pad != hw:
        ae_flat = jnp.pad(ae_flat, ((0, 0), (0, hw_pad - hw)))
    ind2 = ind.reshape(b, OP).astype(jnp.int32)
    mask = ind_mask.astype(jnp.float32)
    if b_pad != b:
        # padded rows have mask==0 -> obj_num==0 -> both partials are exactly 0
        ae_flat = jnp.pad(ae_flat, ((0, b_pad - b), (0, 0)))
        ind2 = jnp.pad(ind2, ((0, b_pad - b), (0, 0)))
        mask = jnp.pad(mask, ((0, b_pad - b), (0, 0), (0, 0)))
    ae_rows = ae_flat.reshape(b_pad, nr, 128)   # reshape done in the wrapper

    # VMEM accounting: double-buffered blocks + gather temporaries (+ margin)
    block_bytes = 2 * 4 * (_TB * hw_pad + _TB * OP + _TB * O * P + _TB * 2)
    temp_bytes = 4 * (_TB * OP * nr + 3 * _TB * OP * 128 + 3 * _TB * hw_pad)
    vmem_limit = min(48 << 20, max(32 << 20, 2 * (block_bytes + temp_bytes)))

    out = pl.pallas_call(
        _ae_loss_kernel,
        out_shape=jax.ShapeDtypeStruct((b_pad, 2), jnp.float32),
        grid_spec=pltpu.PrefetchScalarGridSpec(
            num_scalar_prefetch=0,
            grid=(g,),
            in_specs=[
                pl.BlockSpec((_TB, nr, 128), lambda i: (i, 0, 0)),
                pl.BlockSpec((_TB, OP), lambda i: (i, 0)),
                pl.BlockSpec((_TB, O, P), lambda i: (i, 0, 0)),
            ],
            out_specs=pl.BlockSpec((_TB, 2), lambda i: (i, 0)),
        ),
        compiler_params=pltpu.CompilerParams(
            dimension_semantics=("parallel",),
            vmem_limit_bytes=vmem_limit),
    )(ae_rows, ind2, mask)

    pull = jnp.sum(out[:b, 0]) / b
    push = jnp.sum(out[:b, 1]) / b
    return pull, push


def ae_loss_ref(ae, ind, ind_mask):
    """Pure-JAX reference mirroring the PyTorch forward."""
    b, _, h, w = ae.shape
    _, O, P = ind.shape
    ae_flat = ae.reshape(b, h * w)
    tag = jnp.take_along_axis(ae_flat, ind.reshape(b, O * P), axis=1).reshape(b, O, P)
    obj_mask = (ind_mask.sum(2) != 0).astype(jnp.float32)
    tag_mean = (tag * ind_mask).sum(2) / (ind_mask.sum(2) + 1e-4)
    pull_dist = (tag - tag_mean[:, :, None]) ** 2 * ind_mask
    obj_num = obj_mask.sum(1)
    pull = (pull_dist.sum((1, 2)) / (obj_num + 1e-4)).sum() / b
    push_dist = jnp.maximum(0.0, 1.0 - jnp.abs(tag_mean[:, None, :] - tag_mean[:, :, None]))
    pair = obj_mask[:, None, :] * obj_mask[:, :, None]
    push_dist = push_dist * pair
    push = ((push_dist.sum((1, 2)) - obj_num) / (obj_num * (obj_num - 1.0) + 1e-4)).sum() / b
    return pull, push


if __name__ == "__main__":
    key = jax.random.PRNGKey(0)
    b, h, w = 2, 16, 16
    max_objs, max_parts = 4, 8

    k1, k2, k3 = jax.random.split(key, 3)
    ae = jax.random.normal(k1, (b, 1, h, w), dtype=jnp.float32)
    ind = jax.random.randint(k2, (b, max_objs, max_parts), 0, h * w, dtype=jnp.int32)
    ind_mask = (jax.random.uniform(k3, (b, max_objs, max_parts)) > 0.3).astype(jnp.float32)
    # make one object fully empty to exercise obj_mask handling
    ind_mask = ind_mask.at[0, -1].set(0.0)

    pull, push = jax.block_until_ready(ae_loss_pallas(ae, ind, ind_mask))
    pull_r, push_r = ae_loss_ref(ae, ind, ind_mask)

    # exact divides + hi/lo-split MXU gather -> tight tolerance vs. the reference
    assert jnp.allclose(pull, pull_r, rtol=1e-3, atol=1e-4), (pull, pull_r)
    assert jnp.allclose(push, push_r, rtol=1e-3, atol=1e-4), (push, push_r)
    print("KERNEL_OK")
</pallas_src>

<mosaic_0001>
module attributes {stable_mosaic.version = 11 : i64} {
  func.func @_ae_loss_kernel(%arg0: i32, %arg1: memref<8x8x128xf32, #tpu.memory_space<vmem>>, %arg2: memref<8x32xi32, #tpu.memory_space<vmem>>, %arg3: memref<8x4x8xf32, #tpu.memory_space<vmem>>, %arg4: memref<8x2xf32, #tpu.memory_space<vmem>>) attributes {dimension_semantics = [#tpu.dimension_semantics<parallel>], iteration_bounds = array<i64: 1>, scalar_prefetch = 0 : i64, scratch_operands = 0 : i64, tpu.core_type = #tpu.core_type<tc>, window_params = [{transform_indices = @transform_0, window_bounds = array<i64: 8, 8, 128>}, {transform_indices = @transform_1, window_bounds = array<i64: 8, 32>}, {transform_indices = @transform_2, window_bounds = array<i64: 8, 4, 8>}, {transform_indices = @transform_3, window_bounds = array<i64: 8, 2>}]} {
    %c0 = arith.constant 0 : index
    %c0_0 = arith.constant 0 : index
    %0 = vector.load %arg2[%c0, %c0_0] : memref<8x32xi32, #tpu.memory_space<vmem>>, vector<8x32xi32>
    %c7_i32 = arith.constant 7 : i32
    %1 = vector.broadcast %c7_i32 : i32 to vector<8x32xi32>
    %2 = arith.shrsi %0, %1 : vector<8x32xi32>
    %c127_i32 = arith.constant 127 : i32
    %3 = vector.broadcast %c127_i32 : i32 to vector<8x32xi32>
    %4 = arith.andi %0, %3 : vector<8x32xi32>
    %5 = tpu.iota {dimensions = array<i32: 2>} : vector<1x1x8xi32>
    %6 = vector.shape_cast %2 : vector<8x32xi32> to vector<8x32x1xi32>
    %7 = vector.broadcast %6 : vector<8x32x1xi32> to vector<8x32x8xi32>
    %8 = vector.broadcast %5 : vector<1x1x8xi32> to vector<8x32x8xi32>
    %9 = arith.cmpi eq, %7, %8 : vector<8x32x8xi32>
    %10 = arith.extui %9 : vector<8x32x8xi1> to vector<8x32x8xi32>
    %11 = arith.sitofp %10 : vector<8x32x8xi32> to vector<8x32x8xf32>
    %c0_1 = arith.constant 0 : index
    %c0_2 = arith.constant 0 : index
    %c0_3 = arith.constant 0 : index
    %12 = vector.load %arg1[%c0_1, %c0_2, %c0_3] : memref<8x8x128xf32, #tpu.memory_space<vmem>>, vector<8x8x128xf32>
    %13 = arith.truncf %12 : vector<8x8x128xf32> to vector<8x8x128xbf16>
    %14 = arith.extf %13 : vector<8x8x128xbf16> to vector<8x8x128xf32>
    %15 = arith.subf %12, %14 : vector<8x8x128xf32>
    "tpu.trace_start"() <{level = 10 : i32, message = "bon,bnl->bol"}> : () -> ()
    %cst = arith.constant dense<0.000000e+00> : vector<8x32x128xf32>
    %16 = tpu.matmul %11, %14, %cst {dimension_numbers = #tpu.dot_dimension_numbers<[2], [1], [1], [2], [0, 0, 0, 1, 1, 2], [0], [0]>} : vector<8x32x8xf32>, vector<8x8x128xf32>, vector<8x32x128xf32> -> vector<8x32x128xf32>
    %cst_4 = arith.constant dense<0.000000e+00> : vector<8x32x128xf32>
    %17 = tpu.matmul %11, %15, %cst_4 {dimension_numbers = #tpu.dot_dimension_numbers<[2], [1], [1], [2], [0, 0, 0, 1, 1, 2], [0], [0]>} : vector<8x32x8xf32>, vector<8x8x128xf32>, vector<8x32x128xf32> -> vector<8x32x128xf32>
    "tpu.trace_stop"() : () -> ()
    %18 = arith.addf %16, %17 : vector<8x32x128xf32>
    %19 = tpu.iota {dimensions = array<i32: 2>} : vector<1x1x128xi32>
    %20 = vector.shape_cast %4 : vector<8x32xi32> to vector<8x32x1xi32>
    %21 = vector.broadcast %20 : vector<8x32x1xi32> to vector<8x32x128xi32>
    %22 = vector.broadcast %19 : vector<1x1x128xi32> to vector<8x32x128xi32>
    %23 = arith.cmpi eq, %21, %22 : vector<8x32x128xi32>
    %cst_5 = arith.constant 0.000000e+00 : f32
    %24 = vector.broadcast %cst_5 : f32 to vector<8x32x128xf32>
    %25 = arith.select %23, %18, %24 : vector<8x32x128xi1>, vector<8x32x128xf32>
    %cst_6 = arith.constant dense<0.000000e+00> : vector<8x32xf32>
    %26 = vector.multi_reduction <add>, %25, %cst_6 [2] : vector<8x32x128xf32> to vector<8x32xf32>
    %27 = vector.shape_cast %26 : vector<8x32xf32> to vector<8x4x8xf32>
    %c0_7 = arith.constant 0 : index
    %c0_8 = arith.constant 0 : index
    %c0_9 = arith.constant 0 : index
    %28 = vector.load %arg3[%c0_7, %c0_8, %c0_9] : memref<8x4x8xf32, #tpu.memory_space<vmem>>, vector<8x4x8xf32>
    %cst_10 = arith.constant dense<0.000000e+00> : vector<8x4xf32>
    %29 = vector.multi_reduction <add>, %28, %cst_10 [2] : vector<8x4x8xf32> to vector<8x4xf32>
    %cst_11 = arith.constant 0.000000e+00 : f32
    %30 = vector.broadcast %cst_11 : f32 to vector<8x4xf32>
    %31 = arith.cmpf one, %29, %30 : vector<8x4xf32>
    %32 = arith.extui %31 : vector<8x4xi1> to vector<8x4xi32>
    %33 = arith.sitofp %32 : vector<8x4xi32> to vector<8x4xf32>
    %34 = arith.mulf %27, %28 : vector<8x4x8xf32>
    %cst_12 = arith.constant dense<0.000000e+00> : vector<8x4xf32>
    %35 = vector.multi_reduction <add>, %34, %cst_12 [2] : vector<8x4x8xf32> to vector<8x4xf32>
    %cst_13 = arith.constant 9.99999974E-5 : f32
    %36 = vector.broadcast %cst_13 : f32 to vector<8x4xf32>
    %37 = arith.addf %29, %36 : vector<8x4xf32>
    %38 = arith.divf %35, %37 : vector<8x4xf32>
    %cst_14 = arith.constant dense<0.000000e+00> : vector<8xf32>
    %39 = vector.multi_reduction <add>, %33, %cst_14 [1] : vector<8x4xf32> to vector<8xf32>
    %40 = vector.shape_cast %39 : vector<8xf32> to vector<8x1xf32>
    %41 = vector.shape_cast %38 : vector<8x4xf32> to vector<8x4x1xf32>
    %42 = vector.broadcast %41 : vector<8x4x1xf32> to vector<8x4x8xf32>
    %43 = arith.subf %27, %42 : vector<8x4x8xf32>
    %44 = arith.mulf %43, %43 : vector<8x4x8xf32>
    %45 = arith.mulf %44, %28 : vector<8x4x8xf32>
    %cst_15 = arith.constant dense<0.000000e+00> : vector<8x4xf32>
    %46 = vector.multi_reduction <add>, %45, %cst_15 [2] : vector<8x4x8xf32> to vector<8x4xf32>
    %cst_16 = arith.constant dense<0.000000e+00> : vector<8xf32>
    %47 = vector.multi_reduction <add>, %46, %cst_16 [1] : vector<8x4xf32> to vector<8xf32>
    %48 = vector.shape_cast %47 : vector<8xf32> to vector<8x1xf32>
    %cst_17 = arith.constant 9.99999974E-5 : f32
    %49 = vector.broadcast %cst_17 : f32 to vector<8x1xf32>
    %50 = arith.addf %40, %49 : vector<8x1xf32>
    %51 = arith.divf %48, %50 : vector<8x1xf32>
    %52 = vector.shape_cast %38 : vector<8x4xf32> to vector<8x4x1xf32>
    %53 = vector.shape_cast %38 : vector<8x4xf32> to vector<8x1x4xf32>
    %54 = vector.broadcast %52 : vector<8x4x1xf32> to vector<8x4x4xf32>
    %55 = vector.broadcast %53 : vector<8x1x4xf32> to vector<8x4x4xf32>
    %56 = arith.subf %54, %55 : vector<8x4x4xf32>
    %57 = math.absf %56 : vector<8x4x4xf32>
    %cst_18 = arith.constant 1.000000e+00 : f32
    %58 = vector.broadcast %cst_18 : f32 to vector<8x4x4xf32>
    %59 = arith.subf %58, %57 : vector<8x4x4xf32>
    %cst_19 = arith.constant 0.000000e+00 : f32
    %60 = vector.broadcast %cst_19 : f32 to vector<8x4x4xf32>
    %61 = arith.maximumf %60, %59 : vector<8x4x4xf32>
    %62 = vector.shape_cast %33 : vector<8x4xf32> to vector<8x4x1xf32>
    %63 = vector.shape_cast %33 : vector<8x4xf32> to vector<8x1x4xf32>
    %64 = vector.broadcast %62 : vector<8x4x1xf32> to vector<8x4x4xf32>
    %65 = vector.broadcast %63 : vector<8x1x4xf32> to vector<8x4x4xf32>
    %66 = arith.mulf %64, %65 : vector<8x4x4xf32>
    %67 = arith.mulf %61, %66 : vector<8x4x4xf32>
    %cst_20 = arith.constant dense<0.000000e+00> : vector<8x4xf32>
    %68 = vector.multi_reduction <add>, %67, %cst_20 [2] : vector<8x4x4xf32> to vector<8x4xf32>
    %cst_21 = arith.constant dense<0.000000e+00> : vector<8xf32>
    %69 = vector.multi_reduction <add>, %68, %cst_21 [1] : vector<8x4xf32> to vector<8xf32>
    %70 = vector.shape_cast %69 : vector<8xf32> to vector<8x1xf32>
    %71 = arith.subf %70, %40 : vector<8x1xf32>
    %cst_22 = arith.constant 1.000000e+00 : f32
    %72 = vector.broadcast %cst_22 : f32 to vector<8x1xf32>
    %73 = arith.subf %40, %72 : vector<8x1xf32>
    %74 = arith.mulf %40, %73 : vector<8x1xf32>
    %cst_23 = arith.constant 9.99999974E-5 : f32
    %75 = vector.broadcast %cst_23 : f32 to vector<8x1xf32>
    %76 = arith.addf %74, %75 : vector<8x1xf32>
    %77 = arith.divf %71, %76 : vector<8x1xf32>
    %78 = tpu.concatenate %51, %77 in 1 : vector<8x1xf32>, vector<8x1xf32> -> vector<8x2xf32>
    %c0_24 = arith.constant 0 : index
    %c0_25 = arith.constant 0 : index
    %79 = vector.load %arg4[%c0_24, %c0_25] : memref<8x2xf32, #tpu.memory_space<vmem>>, vector<8x2xf32>
    tpu.vector_store %arg4[%c0_24, %c0_25], %78 {strides = array<i32>} : memref<8x2xf32, #tpu.memory_space<vmem>>, vector<8x2xf32>,
    return
  }
  func.func @transform_0(%arg0: i32) -> (i32, i32, i32) {
    %c0_i32 = arith.constant 0 : i32
    %c0_i32_0 = arith.constant 0 : i32
    %c0_i32_1 = arith.constant 0 : i32
    return %arg0, %c0_i32, %c0_i32_0 : i32, i32, i32
  }
  func.func @transform_1(%arg0: i32) -> (i32, i32) {
    %c0_i32 = arith.constant 0 : i32
    %c0_i32_0 = arith.constant 0 : i32
    return %arg0, %c0_i32 : i32, i32
  }
  func.func @transform_2(%arg0: i32) -> (i32, i32, i32) {
    %c0_i32 = arith.constant 0 : i32
    %c0_i32_0 = arith.constant 0 : i32
    %c0_i32_1 = arith.constant 0 : i32
    return %arg0, %c0_i32, %c0_i32_0 : i32, i32, i32
  }
  func.func @transform_3(%arg0: i32) -> (i32, i32) {
    %c0_i32 = arith.constant 0 : i32
    %c0_i32_0 = arith.constant 0 : i32
    return %arg0, %c0_i32 : i32, i32
  }
}

</mosaic_0001>

<bundles_post_ra>
// kernel: tpu_custom_call.1
= control target key start
LH: loop header
LB: loop body
LE: loop exit
PB: predicated region body
PF: predicated region fallthrough
CT: control target
= control target key end

     0   :  { %8 = vsyncpa [#allocation3], 0  ;;  %s4193_s0 = inlined_call_operand.hbm [shape: f32[8,8,128], index: 0, kind: input, shape index: {}]   ;;  %s4194_s1 = inlined_call_operand.hbm [shape: s32[8,32], index: 1, kind: input, shape index: {}]   ;;  %s4195_s2 = inlined_call_operand.hbm [shape: f32[8,4,8], index: 2, kind: input, shape index: {}]   ;;  %s4196_s3 = inlined_call_operand.vmem [shape: f32[8,2], index: 3, kind: output, shape index: {}]  }
   0x1   :  { %9 = vsyncpa [#allocation5], 0  ;;  %s3381_s12 = smov [#allocation4]   ;;  %s3382_s14 = smov [#allocation2]  }
   0x2   :  { %s28_s13 = sshll.u32 %s3381_s12, 4  ;;  %s15_s15 = sshll.u32 %s3382_s14, 4  ;;  %s29_s13 = int_to_ptr.vmem [resolvable:$true] %s28_s13  ;;  %s3412_s15 = int_to_ptr.vmem [resolvable:$true] %s15_s15 }
   0x3   :  { %s3311_s18 = scalar_lea.hbm %s4194_s1, 128 }
   0x4   :  { %p3312_p0 = scmp.ne.s32.totalorder %s4194_s1, %s3311_s18  ;;  %p3315_p1 = scmp.lt.u32.totalorder %s3311_s18, %s4194_s1 }
   0x6   :  { %p3317_p2 = pnand %p3315_p1, %p3312_p0 }
   0x8   :  { %3320 = shalt.err (!%p3317_p2)
}
   0x9   :  { %s3321_s23 = scalar_lea.vmem %s29_s13, 128  ;;  %p3326_p4 = scmp.lt.s32.totalorder %s29_s13, %s29_s13 }
   0xa   :  { %p3322_p3 = scmp.ne.s32.totalorder %s29_s13, %s3321_s23  ;;  %p3327_p5 = scmp.lt.s32.totalorder %s3321_s23, %s3321_s23 }
   0xc   :  { %p3328_p6 = por %p3327_p5, %p3326_p4 }
   0xe   :  { %p3329_p7 = pnand %p3328_p6, %p3322_p3 }
  0x10   :  { %3332 = shalt.err (!%p3329_p7)
}
  0x11   :  { %31 = dma.hbm_to_vmem [thread:$0]  %s4194_s1, 128, %s29_s13, [#allocation5]  }
  0x12   :  { %s3333_s28 = scalar_lea.hbm %s4193_s0, 1024 }
  0x13   :  { %p3334_p8 = scmp.ne.s32.totalorder %s4193_s0, %s3333_s28  ;;  %p3337_p9 = scmp.lt.u32.totalorder %s3333_s28, %s4193_s0 }
  0x15   :  { %p3339_p10 = pnand %p3337_p9, %p3334_p8 }
  0x17   :  { %3342 = shalt.err (!%p3339_p10)
}
  0x18   :  { %s3343_s6 = scalar_lea.vmem %s3412_s15, 1024  ;;  %p3348_p12 = scmp.lt.s32.totalorder %s3412_s15, %s3412_s15 }
  0x19   :  { %p3344_p11 = scmp.ne.s32.totalorder %s3412_s15, %s3343_s6  ;;  %p3349_p13 = scmp.lt.s32.totalorder %s3343_s6, %s3343_s6 }
  0x1b   :  { %p3350_p0 = por %p3349_p13, %p3348_p12 }
  0x1d   :  { %p3351_p1 = pnand %p3350_p0, %p3344_p11 }
  0x1f   :  { %3354 = shalt.err (!%p3351_p1)
}
  0x20   :  { %s3383_s1 = smov 128   ;;  %s3384_s7 = smov 8  }
  0x21   :  { %21 = dma.hbm_to_vmem [thread:$0]  %s4193_s0, 1024, %s3412_s15, [#allocation3], %s3383_s1, %s3383_s1, %s3384_s7  }
  0x22   :  { %s3385_s10 = smov [#allocation6]   ;;  %s3355_s14 = scalar_lea.hbm %s4195_s2, 512 }
  0x23   :  { %s37_s11 = sshll.u32 %s3385_s10, 4  ;;  %p3356_p2 = scmp.ne.s32.totalorder %s4195_s2, %s3355_s14  ;;  %s38_s11 = int_to_ptr.vmem [resolvable:$true] %s37_s11 }
  0x24   :  { %p3359_p3 = scmp.lt.u32.totalorder %s3355_s14, %s4195_s2 }
  0x26   :  { %p3361_p4 = pnand %p3359_p3, %p3356_p2 }
  0x28   :  { %3364 = shalt.err (!%p3361_p4)
}
  0x29   :  { %s3365_s20 = scalar_lea.vmem %s38_s11, 512  ;;  %p3370_p6 = scmp.lt.s32.totalorder %s38_s11, %s38_s11 }
  0x2a   :  { %p3366_p5 = scmp.ne.s32.totalorder %s38_s11, %s3365_s20  ;;  %p3371_p7 = scmp.lt.s32.totalorder %s3365_s20, %s3365_s20 }
  0x2c   :  { %p3372_p8 = por %p3371_p7, %p3370_p6 }
  0x2e   :  { %p3373_p9 = pnand %p3372_p8, %p3366_p5 }
  0x30   :  { %3376 = shalt.err (!%p3373_p9)
}
  0x31   :  { %s3386_s0 = smov 64   ;;  %s3387_s15 = smov 4  }
  0x32   :  { %43 = dma.hbm_to_vmem [thread:$0]  %s4195_s2, 512, %s38_s11, [#allocation5], %s3386_s0, %s3386_s0, %s3387_s15  }
  0x33   :  { %3377 = dma.done.wait [#allocation3], 1024  }
  0x34   :  { %3378 = vsyncadd [#allocation3], 4294966272 }
  0x35   :  { %3379 = dma.done.wait [#allocation5], 640  }
  0x36   :  { %3380 = vsyncadd [#allocation5], 4294966656  ;;  %v56_v0 = vlaneseq  ;;  %v3460_v4 = vld [vmem:[#allocation4] sm:$0xff]  ;;  %v307_v6 = vld [vmem:[#allocation2 + $0x8] sm:$0xff]  ;;  %vm338_vm0 = vcmask 64512   ;;  %v3388_v51 = vmov 0.0  }
  0x37   :  { %v306_v5 = vld [vmem:[#allocation2] sm:$0xff]  ;;  %v54_v7 = vshra.s32 %v3460_v4, 7  ;;  %v315_v9 = vpack.c.bf16 %v307_v6, %v307_v6  ;;  %v308_v10 = vld [vmem:[#allocation2 + $0x10] sm:$0xff]  ;;  %v309_v16 = vld [vmem:[#allocation2 + $0x18] sm:$0xff]  ;;  %v3498_v36 = vand.u32 127, %v3460_v4 }
  0x38   :  { %v3456_v1 = vshrl.u32 %v56_v0, 7  ;;  %v314_v8 = vpack.c.bf16 %v306_v5, %v306_v5  ;;  %v316_v15 = vpack.c.bf16 %v308_v10, %v308_v10  ;;  %v317_v20 = vpack.c.bf16 %v309_v16, %v309_v16  ;;  %v310_v41 = vld [vmem:[#allocation2 + $0x20] sm:$0xff]  ;;  %v311_v42 = vld [vmem:[#allocation2 + $0x28] sm:$0xff]  ;;  %v312_v60 = vld [vmem:[#allocation2 + $0x30] sm:$0xff] }
  0x39   :  { %v3469_v14 = vunpack.c.l.bf16 %v315_v9  ;;  %v3509_v43 = vand.u32 127, %v56_v0  ;;  %v318_v44 = vpack.c.bf16 %v310_v41, %v310_v41  ;;  %v319_v45 = vpack.c.bf16 %v311_v42, %v311_v42  ;;  %v313_v4 = vld [vmem:[#allocation2 + $0x38] sm:$0xff] }
  0x3a   :  { %v60_v2 = vsub.s32 0, %v3456_v1  ;;  %v79_v3 = vsub.s32 1, %v3456_v1  ;;  %v3467_v13 = vunpack.c.l.bf16 %v314_v8  ;;  %v3473_v19 = vunpack.c.l.bf16 %v316_v15 }
  0x3b   :  { %v331_v18 = vsub.f32 %v307_v6, %v3469_v14  ;;  %v3478_v22 = vunpack.c.l.bf16 %v317_v20  ;;  %v98_v24 = vsub.s32 2, %v3456_v1  ;;  %v117_v26 = vsub.s32 3, %v3456_v1 }
  0x3c   :  { %v61_v11 = vrot.slane %v54_v7, %v60_v2  ;;  %v80_v12 = vrot.slane %v54_v7, %v79_v3  ;;  %v330_v17 = vsub.f32 %v306_v5, %v3467_v13  ;;  %v3476_v21 = vsub.f32 %v308_v10, %v3473_v19 }
  0x3d   :  { %3126 = vmatprep.subr.mxu1 %v331_v18  ;;  %v3481_v23 = vsub.f32 %v309_v16, %v3478_v22  ;;  %v99_v25 = vrot.slane %v54_v7, %v98_v24  ;;  %v118_v27 = vrot.slane %v54_v7, %v117_v26  ;;  %v136_v28 = vsub.s32 4, %v3456_v1 }
  0x3e   :  { %63 = vbcast.lane.b32.xlu0 %v61_v11, 256  ;;  %82 = vbcast.lane.b32.xlu1 %v80_v12, 256  ;;  %v155_v30 = vsub.s32 5, %v3456_v1  ;;  %v174_v32 = vsub.s32 6, %v3456_v1  ;;  %v193_v34 = vsub.s32 7, %v3456_v1  ;;  %v1798_v37 = vrot.slane %v3498_v36, %v60_v2 }
  0x3f   :  { %3118 = vmatprep.subr.mxu0 %v330_v17  ;;  %3127 = vmatpush3.msra.mxu1 %v331_v18  ;;  %v137_v29 = vrot.slane %v54_v7, %v136_v28  ;;  %v1817_v38 = vrot.slane %v3498_v36, %v79_v3  ;;  %v1836_v39 = vrot.slane %v3498_v36, %v98_v24  ;;  %v3514_v49 = vunpack.c.l.bf16 %v318_v44 }
  0x40   :  { %3119 = vmatpush3.msra.mxu0 %v330_v17  ;;  %3142 = vmatprep.subr.mxu1 %v3481_v23  ;;  %v156_v31 = vrot.slane %v54_v7, %v155_v30  ;;  %v175_v33 = vrot.slane %v54_v7, %v174_v32  ;;  %v194_v35 = vrot.slane %v54_v7, %v193_v34  ;;  %v3516_v50 = vunpack.c.l.bf16 %v319_v45 }
  0x41   :  { %3134 = vmatprep.subr.mxu0 %v3476_v21  ;;  %v1855_v40 = vrot.slane %v3498_v36, %v117_v26  ;;  %v1874_v48 = vrot.slane %v3498_v36, %v136_v28  ;;  %v334_v56 = vsub.f32 %v310_v41, %v3514_v49  ;;  %v320_v63 = vpack.c.bf16 %v312_v60, %v312_v60 }
  0x42   :  { %67 = vbcast.lane.b32.xlu0 %v61_v11, 264  ;;  %86 = vbcast.lane.b32.xlu1 %v80_v12, 264  ;;  %v3532_v57 = vsub.f32 %v311_v42, %v3516_v50  ;;  %v1893_v3 = vrot.slane %v3498_v36, %v155_v30  ;;  %v321_v10 = vpack.c.bf16 %v313_v4, %v313_v4 }
  0x43   :  { %v3564_v7 = vunpack.c.l.bf16 %v320_v63  ;;  %v1912_v20 = vrot.slane %v3498_v36, %v174_v32 }
  0x44   :  { %v3585_v18 = vunpack.c.l.bf16 %v321_v10 }
  0x45   :  { %v336_v15 = vsub.f32 %v312_v60, %v3564_v7 }
  0x46   :  { %71 = vbcast.lane.b32.xlu0 %v61_v11, 272  ;;  %75 = vbcast.lane.b32.xlu1 %v61_v11, 280  ;;  %v337_v26 = vsub.f32 %v313_v4, %v3585_v18 }
  0x4a   :  { %90 = vbcast.lane.b32.xlu0 %v80_v12, 272  ;;  %94 = vbcast.lane.b32.xlu1 %v80_v12, 280 }
  0x4e   :  { %101 = vbcast.lane.b32.xlu0 %v99_v25, 256  ;;  %105 = vbcast.lane.b32.xlu1 %v99_v25, 264 }
  0x52   :  { %120 = vbcast.lane.b32.xlu0 %v118_v27, 256  ;;  %124 = vbcast.lane.b32.xlu1 %v118_v27, 264 }
  0x56   :  { %109 = vbcast.lane.b32.xlu0 %v99_v25, 272  ;;  %113 = vbcast.lane.b32.xlu1 %v99_v25, 280 }
  0x5a   :  { %128 = vbcast.lane.b32.xlu0 %v118_v27, 272  ;;  %132 = vbcast.lane.b32.xlu1 %v118_v27, 280 }
  0x5e   :  { %139 = vbcast.lane.b32.xlu0 %v137_v29, 256  ;;  %143 = vbcast.lane.b32.xlu1 %v137_v29, 264 }
  0x62   :  { %158 = vbcast.lane.b32.xlu0 %v156_v31, 256  ;;  %162 = vbcast.lane.b32.xlu1 %v156_v31, 264 }
  0x66   :  { %147 = vbcast.lane.b32.xlu0 %v137_v29, 272  ;;  %151 = vbcast.lane.b32.xlu1 %v137_v29, 280 }
  0x6a   :  { %166 = vbcast.lane.b32.xlu0 %v156_v31, 272  ;;  %170 = vbcast.lane.b32.xlu1 %v156_v31, 280  ;;  %v1931_v31 = vrot.slane %v3498_v36, %v193_v34 }
  0x6e   :  { %177 = vbcast.lane.b32.xlu0 %v175_v33, 256  ;;  %181 = vbcast.lane.b32.xlu1 %v175_v33, 264 }
  0x72   :  { %196 = vbcast.lane.b32.xlu0 %v194_v35, 256  ;;  %200 = vbcast.lane.b32.xlu1 %v194_v35, 264 }
  0x76   :  { %185 = vbcast.lane.b32.xlu0 %v175_v33, 272  ;;  %189 = vbcast.lane.b32.xlu1 %v175_v33, 280 }
  0x7a   :  { %204 = vbcast.lane.b32.xlu0 %v194_v35, 272  ;;  %208 = vbcast.lane.b32.xlu1 %v194_v35, 280 }
  0x7e   :  { %1804 = vbcast.lane.b32.xlu1 %v1798_v37, 264  ;;  %1800 = vbcast.lane.b32.xlu0 %v1798_v37, 256 }
  0x82   :  { %1812 = vbcast.lane.b32.xlu1 %v1798_v37, 280  ;;  %1808 = vbcast.lane.b32.xlu0 %v1798_v37, 272 }
  0x86   :  { %1823 = vbcast.lane.b32.xlu1 %v1817_v38, 264  ;;  %1819 = vbcast.lane.b32.xlu0 %v1817_v38, 256 }
  0x8a   :  { %1831 = vbcast.lane.b32.xlu1 %v1817_v38, 280  ;;  %1827 = vbcast.lane.b32.xlu0 %v1817_v38, 272 }
  0x8e   :  { %1842 = vbcast.lane.b32.xlu1 %v1836_v39, 264  ;;  %1838 = vbcast.lane.b32.xlu0 %v1836_v39, 256 }
  0x92   :  { %1850 = vbcast.lane.b32.xlu1 %v1836_v39, 280  ;;  %1846 = vbcast.lane.b32.xlu0 %v1836_v39, 272 }
  0x96   :  { %1861 = vbcast.lane.b32.xlu1 %v1855_v40, 264  ;;  %1857 = vbcast.lane.b32.xlu0 %v1855_v40, 256 }
  0x9a   :  { %1869 = vbcast.lane.b32.xlu1 %v1855_v40, 280  ;;  %1865 = vbcast.lane.b32.xlu0 %v1855_v40, 272 }
  0x9e   :  { %1880 = vbcast.lane.b32.xlu1 %v1874_v48, 264  ;;  %1876 = vbcast.lane.b32.xlu0 %v1874_v48, 256 }
  0xa2   :  { %1888 = vbcast.lane.b32.xlu1 %v1874_v48, 280  ;;  %1884 = vbcast.lane.b32.xlu0 %v1874_v48, 272 }
  0xa6   :  { %1899 = vbcast.lane.b32.xlu1 %v1893_v3, 264  ;;  %1895 = vbcast.lane.b32.xlu0 %v1893_v3, 256 }
  0xaa   :  { %1907 = vbcast.lane.b32.xlu1 %v1893_v3, 280  ;;  %1903 = vbcast.lane.b32.xlu0 %v1893_v3, 272 }
  0xae   :  { %1918 = vbcast.lane.b32.xlu1 %v1912_v20, 264  ;;  %1914 = vbcast.lane.b32.xlu0 %v1912_v20, 256 }
  0xb0   :  { %v64_v46 = vpop.permute.xlu0 %63  ;;  %v83_v47 = vpop.permute.xlu1 %82 }
  0xb1   :  { %vm210_vm1 = vcmp.eq.s32.totalorder %v64_v46, %v3509_v43  ;;  %vm214_vm2 = vcmp.eq.s32.totalorder %v83_v47, %v3509_v43 }
  0xb2   :  { %v3519_v52 = vsel %vm210_vm1, 1.0, %v3388_v51  ;;  %v3522_v53 = vsel %vm214_vm2, 1.0, %v3388_v51  ;;  %1926 = vbcast.lane.b32.xlu1 %v1912_v20, 280  ;;  %1922 = vbcast.lane.b32.xlu0 %v1912_v20, 272 }
  0xb3   :  { %3120 = vmatprep.mubr.msk.f32.mxu0 %vm338_vm0, %v3519_v52  ;;  %3128 = vmatprep.mubr.msk.f32.mxu1 %vm338_vm0, %v3522_v53 }
  0xb4   :  { %v68_v54 = vpop.permute.xlu0 %67  ;;  %v87_v55 = vpop.permute.xlu1 %86 }
  0xb5   :  { %vm211_vm3 = vcmp.eq.s32.totalorder %v68_v54, %v3509_v43  ;;  %vm215_vm4 = vcmp.eq.s32.totalorder %v87_v55, %v3509_v43 }
  0xb6   :  { %v3535_v58 = vsel %vm211_vm3, 1.0, %v3388_v51  ;;  %v3538_v59 = vsel %vm215_vm4, 1.0, %v3388_v51  ;;  %1937 = vbcast.lane.b32.xlu1 %v1931_v31, 264  ;;  %1933 = vbcast.lane.b32.xlu0 %v1931_v31, 256 }
  0xb7   :  { %3121 = vmatmul.mubr.msk.f32.vlgmr.msra.gmra.mrb[0].mxu0 %vm338_vm0, %v3535_v58  ;;  %3129 = vmatmul.mubr.msk.f32.vlgmr.msra.gmra.mrb[0].mxu1 %vm338_vm0, %v3538_v59 }
  0xb8   :  { %v72_v61 = vpop.permute.xlu0 %71  ;;  %v76_v62 = vpop.permute.xlu1 %75  ;;  %3135 = vmatpush3.msra.mxu0 %v3476_v21  ;;  %3143 = vmatpush3.msra.mxu1 %v3481_v23 }
  0xb9   :  { %vm212_vm5 = vcmp.eq.s32.totalorder %v72_v61, %v3509_v43  ;;  %vm213_vm6 = vcmp.eq.s32.totalorder %v76_v62, %v3509_v43  ;;  %3150 = vmatprep.subr.mxu0 %v334_v56  ;;  %3158 = vmatprep.subr.mxu1 %v3532_v57 }
  0xba   :  { %v3550_v0 = vsel %vm212_vm5, 1.0, %v3388_v51  ;;  %v3553_v2 = vsel %vm213_vm6, 1.0, %v3388_v51  ;;  %1945 = vbcast.lane.b32.xlu1 %v1931_v31, 280  ;;  %1941 = vbcast.lane.b32.xlu0 %v1931_v31, 272 }
  0xbb   :  { %3123 = vmatprep.mubr.msk.f32.mxu0 %vm338_vm0, %v3550_v0 }
  0xbc   :  { %3124 = vmatmul.mubr.msk.f32.gmra.mrb[2].mxu0 %vm338_vm0, %v3553_v2  ;;  %v91_v5 = vpop.permute.xlu0 %90  ;;  %v95_v6 = vpop.permute.xlu1 %94 }
  0xbd   :  { %vm216_vm7 = vcmp.eq.s32.totalorder %v91_v5, %v3509_v43  ;;  %vm217_vm8 = vcmp.eq.s32.totalorder %v95_v6, %v3509_v43 }
  0xbe   :  { %v3567_v8 = vsel %vm216_vm7, 1.0, %v3388_v51  ;;  %v3570_v9 = vsel %vm217_vm8, 1.0, %v3388_v51 }
  0xbf   :  { %3131 = vmatprep.mubr.msk.f32.mxu1 %vm338_vm0, %v3567_v8 }
  0xc0   :  { %3132 = vmatmul.mubr.msk.f32.gmra.mrb[2].mxu1 %vm338_vm0, %v3570_v9  ;;  %v102_v11 = vpop.permute.xlu0 %101  ;;  %v106_v12 = vpop.permute.xlu1 %105 }
  0xc1   :  { %vm218_vm9 = vcmp.eq.s32.totalorder %v102_v11, %v3509_v43  ;;  %vm219_vm10 = vcmp.eq.s32.totalorder %v106_v12, %v3509_v43 }
  0xc2   :  { %v3580_v16 = vsel %vm218_vm9, 1.0, %v3388_v51  ;;  %v3583_v17 = vsel %vm219_vm10, 1.0, %v3388_v51 }
  0xc3   :  { %3136 = vmatprep.mubr.msk.f32.mxu0 %vm338_vm0, %v3580_v16 }
  0xc4   :  { %3137 = vmatmul.mubr.msk.f32.vlgmr.msra.gmra.mrb[4].mxu0 %vm338_vm0, %v3583_v17  ;;  %v121_v21 = vpop.permute.xlu0 %120  ;;  %v125_v23 = vpop.permute.xlu1 %124 }
  0xc5   :  { %vm222_vm11 = vcmp.eq.s32.totalorder %v121_v21, %v3509_v43  ;;  %vm223_vm12 = vcmp.eq.s32.totalorder %v125_v23, %v3509_v43  ;;  %3151 = vmatpush3.msra.mxu0 %v334_v56 }
  0xc6   :  { %v3597_v24 = vsel %vm222_vm11, 1.0, %v3388_v51  ;;  %v3600_v25 = vsel %vm223_vm12, 1.0, %v3388_v51  ;;  %3166 = vmatprep.subr.mxu0 %v336_v15 }
  0xc7   :  { %3144 = vmatprep.mubr.msk.f32.mxu1 %vm338_vm0, %v3597_v24 }
  0xc8   :  { %3145 = vmatmul.mubr.msk.f32.vlgmr.msra.gmra.mrb[4].mxu1 %vm338_vm0, %v3600_v25  ;;  %v110_v27 = vpop.permute.xlu0 %109  ;;  %v114_v28 = vpop.permute.xlu1 %113 }
  0xc9   :  { %vm220_vm13 = vcmp.eq.s32.totalorder %v110_v27, %v3509_v43  ;;  %vm221_vm14 = vcmp.eq.s32.totalorder %v114_v28, %v3509_v43  ;;  %3159 = vmatpush3.msra.mxu1 %v3532_v57 }
  0xca   :  { %v3611_v29 = vsel %vm220_vm13, 1.0, %v3388_v51  ;;  %v3614_v30 = vsel %vm221_vm14, 1.0, %v3388_v51  ;;  %3174 = vmatprep.subr.mxu1 %v337_v26 }
  0xcb   :  { %3139 = vmatprep.mubr.msk.f32.mxu0 %vm338_vm0, %v3611_v29 }
  0xcc   :  { %3140 = vmatmul.mubr.msk.f32.gmra.mrb[6].mxu0 %vm338_vm0, %v3614_v30  ;;  %v129_v32 = vpop.permute.xlu0 %128  ;;  %v133_v33 = vpop.permute.xlu1 %132 }
  0xcd   :  { %vm224_vm15 = vcmp.eq.s32.totalorder %v129_v32, %v3509_v43  ;;  %vm225_vm1 = vcmp.eq.s32.totalorder %v133_v33, %v3509_v43 }
  0xce   :  { %v3626_v35 = vsel %vm224_vm15, 1.0, %v3388_v51  ;;  %v3629_v37 = vsel %vm225_vm1, 1.0, %v3388_v51 }
  0xcf   :  { %3147 = vmatprep.mubr.msk.f32.mxu1 %vm338_vm0, %v3626_v35 }
  0xd0   :  { %3148 = vmatmul.mubr.msk.f32.gmra.mrb[6].mxu1 %vm338_vm0, %v3629_v37  ;;  %v140_v34 = vpop.permute.xlu0 %139  ;;  %v144_v36 = vpop.permute.xlu1 %143 }
  0xd1   :  { %vm226_vm2 = vcmp.eq.s32.totalorder %v140_v34, %v3509_v43  ;;  %vm227_vm3 = vcmp.eq.s32.totalorder %v144_v36, %v3509_v43 }
  0xd2   :  { %v3638_v38 = vsel %vm226_vm2, 1.0, %v3388_v51  ;;  %v3641_v39 = vsel %vm227_vm3, 1.0, %v3388_v51 }
  0xd3   :  { %3152 = vmatprep.mubr.msk.f32.mxu0 %vm338_vm0, %v3638_v38 }
  0xd4   :  { %3153 = vmatmul.mubr.msk.f32.vlgmr.msra.gmra.mrb[8].mxu0 %vm338_vm0, %v3641_v39  ;;  %v159_v40 = vpop.permute.xlu0 %158  ;;  %v163_v41 = vpop.permute.xlu1 %162 }
  0xd5   :  { %vm230_vm4 = vcmp.eq.s32.totalorder %v159_v40, %v3509_v43  ;;  %vm231_vm5 = vcmp.eq.s32.totalorder %v163_v41, %v3509_v43  ;;  %3167 = vmatpush3.msra.mxu0 %v336_v15 }
  0xd6   :  { %v3650_v42 = vsel %vm230_vm4, 1.0, %v3388_v51  ;;  %v3653_v44 = vsel %vm231_vm5, 1.0, %v3388_v51  ;;  %3182 = vmatprep.subr.mxu0 %v3467_v13 }
  0xd7   :  { %3160 = vmatprep.mubr.msk.f32.mxu1 %vm338_vm0, %v3650_v42 }
  0xd8   :  { %3161 = vmatmul.mubr.msk.f32.vlgmr.msra.gmra.mrb[8].mxu1 %vm338_vm0, %v3653_v44  ;;  %v148_v45 = vpop.permute.xlu0 %147  ;;  %v152_v46 = vpop.permute.xlu1 %151 }
  0xd9   :  { %vm228_vm6 = vcmp.eq.s32.totalorder %v148_v45, %v3509_v43  ;;  %vm229_vm7 = vcmp.eq.s32.totalorder %v152_v46, %v3509_v43  ;;  %3175 = vmatpush3.msra.mxu1 %v337_v26 }
  0xda   :  { %v3663_v47 = vsel %vm228_vm6, 1.0, %v3388_v51  ;;  %v3666_v48 = vsel %vm229_vm7, 1.0, %v3388_v51  ;;  %3190 = vmatprep.subr.mxu1 %v3469_v14 }
  0xdb   :  { %3155 = vmatprep.mubr.msk.f32.mxu0 %vm338_vm0, %v3663_v47 }
  0xdc   :  { %3156 = vmatmul.mubr.msk.f32.gmra.mrb[10].mxu0 %vm338_vm0, %v3666_v48  ;;  %v167_v54 = vpop.permute.xlu0 %166  ;;  %v171_v55 = vpop.permute.xlu1 %170 }
  0xdd   :  { %vm232_vm8 = vcmp.eq.s32.totalorder %v167_v54, %v3509_v43  ;;  %vm233_vm9 = vcmp.eq.s32.totalorder %v171_v55, %v3509_v43 }
  0xde   :  { %v3676_v56 = vsel %vm232_vm8, 1.0, %v3388_v51  ;;  %v3679_v57 = vsel %vm233_vm9, 1.0, %v3388_v51 }
  0xdf   :  { %3163 = vmatprep.mubr.msk.f32.mxu1 %vm338_vm0, %v3676_v56 }
  0xe0   :  { %3164 = vmatmul.mubr.msk.f32.gmra.mrb[10].mxu1 %vm338_vm0, %v3679_v57  ;;  %v178_v60 = vpop.permute.xlu0 %177  ;;  %v182_v61 = vpop.permute.xlu1 %181 }
  0xe1   :  { %vm234_vm10 = vcmp.eq.s32.totalorder %v178_v60, %v3509_v43  ;;  %vm235_vm11 = vcmp.eq.s32.totalorder %v182_v61, %v3509_v43 }
  0xe2   :  { %v3688_v62 = vsel %vm234_vm10, 1.0, %v3388_v51  ;;  %v3691_v63 = vsel %vm235_vm11, 1.0, %v3388_v51 }
  0xe3   :  { %3168 = vmatprep.mubr.msk.f32.mxu0 %vm338_vm0, %v3688_v62 }
  0xe4   :  { %3169 = vmatmul.mubr.msk.f32.vlgmr.msra.gmra.mrb[12].mxu0 %vm338_vm0, %v3691_v63  ;;  %v197_v3 = vpop.permute.xlu0 %196  ;;  %v201_v4 = vpop.permute.xlu1 %200 }
  0xe5   :  { %vm238_vm12 = vcmp.eq.s32.totalorder %v197_v3, %v3509_v43  ;;  %vm239_vm13 = vcmp.eq.s32.totalorder %v201_v4, %v3509_v43  ;;  %3183 = vmatpush3.msra.mxu0 %v3467_v13 }
  0xe6   :  { %v2961_v5 = vsel %vm238_vm12, 1.0, %v3388_v51  ;;  %v2962_v6 = vsel %vm239_vm13, 1.0, %v3388_v51  ;;  %3198 = vmatprep.subr.mxu0 %v3473_v19 }
  0xe7   :  { %3176 = vmatprep.mubr.msk.f32.mxu1 %vm338_vm0, %v2961_v5 }
  0xe8   :  { %3177 = vmatmul.mubr.msk.f32.vlgmr.msra.gmra.mrb[12].mxu1 %vm338_vm0, %v2962_v6  ;;  %v186_v10 = vpop.permute.xlu0 %185  ;;  %v190_v11 = vpop.permute.xlu1 %189 }
  0xe9   :  { %vm236_vm14 = vcmp.eq.s32.totalorder %v186_v10, %v3509_v43  ;;  %vm237_vm15 = vcmp.eq.s32.totalorder %v190_v11, %v3509_v43  ;;  %3191 = vmatpush3.msra.mxu1 %v3469_v14 }
  0xea   :  { %v2959_v13 = vsel %vm236_vm14, 1.0, %v3388_v51  ;;  %v2960_v12 = vsel %vm237_vm15, 1.0, %v3388_v51  ;;  %3206 = vmatprep.subr.mxu1 %v3478_v22 }
  0xeb   :  { %3171 = vmatprep.mubr.msk.f32.mxu0 %vm338_vm0, %v2959_v13 }
  0xec   :  { %3172 = vmatmul.mubr.msk.f32.gmra.mrb[14].mxu0 %vm338_vm0, %v2960_v12  ;;  %v205_v15 = vpop.permute.xlu0 %204  ;;  %v209_v20 = vpop.permute.xlu1 %208 }
  0xed   :  { %vm240_vm1 = vcmp.eq.s32.totalorder %v205_v15, %v3509_v43  ;;  %vm241_vm2 = vcmp.eq.s32.totalorder %v209_v20, %v3509_v43  ;;  %3184 = vmatprep.mubr.msk.f32.mxu0 %vm338_vm0, %v3519_v52 }
  0xee   :  { %v2963_v14 = vsel %vm240_vm1, 1.0, %v3388_v51  ;;  %v2964_v21 = vsel %vm241_vm2, 1.0, %v3388_v51 }
  0xef   :  { %3179 = vmatprep.mubr.msk.f32.mxu1 %vm338_vm0, %v2963_v14 }
  0xf0   :  { %3180 = vmatmul.mubr.msk.f32.gmra.mrb[14].mxu1 %vm338_vm0, %v2964_v21  ;;  %3185 = vmatmul.mubr.msk.f32.vlgmr.msra.gmra.mrb[0].mxu0 %vm338_vm0, %v3535_v58 }
  0xf1   :  { %3187 = vmatprep.mubr.msk.f32.mxu0 %vm338_vm0, %v3550_v0  ;;  %3192 = vmatprep.mubr.msk.f32.mxu1 %vm338_vm0, %v3522_v53 }
  0xf2   :  { %3199 = vmatpush3.msra.mxu0 %v3473_v19  ;;  %v3389_v19 = vmov 0  }
  0xf3   :  { %3214 = vmatprep.subr.mxu0 %v3514_v49  ;;  %3289 = vset.pattern.permute.xlu1 %v3389_v19 }
  0xf4   :  { %3188 = vmatmul.mubr.msk.f32.gmra.mrb[2].mxu0 %vm338_vm0, %v3553_v2  ;;  %3193 = vmatmul.mubr.msk.f32.vlgmr.msra.gmra.mrb[0].mxu1 %vm338_vm0, %v3538_v59 }
  0xf5   :  { %3195 = vmatprep.mubr.msk.f32.mxu1 %vm338_vm0, %v3567_v8  ;;  %3200 = vmatprep.mubr.msk.f32.mxu0 %vm338_vm0, %v3580_v16 }
  0xf6   :  { %3207 = vmatpush3.msra.mxu1 %v3478_v22  ;;  %3290 = vset.pattern.permute.xlu0 %v3389_v19  ;;  %v1801_v22 = vpop.permute.xlu0 %1800 }
  0xf7   :  { %3222 = vmatprep.subr.mxu1 %v3516_v50  ;;  %vm1947_vm5 = vcmp.eq.s32.totalorder %v1801_v22, %v3509_v43 }
  0xf8   :  { %3196 = vmatmul.mubr.msk.f32.gmra.mrb[2].mxu1 %vm338_vm0, %v3570_v9  ;;  %3201 = vmatmul.mubr.msk.f32.vlgmr.msra.gmra.mrb[4].mxu0 %vm338_vm0, %v3583_v17 }
  0xf9   :  { %3203 = vmatprep.mubr.msk.f32.mxu0 %vm338_vm0, %v3611_v29  ;;  %3208 = vmatprep.mubr.msk.f32.mxu1 %vm338_vm0, %v3597_v24 }
  0xfa   :  { %3215 = vmatpush3.msra.mxu0 %v3514_v49  ;;  %v3787_v49 = vpop.permute.xlu0 %1808 }
  0xfb   :  { %3230 = vmatprep.subr.mxu0 %v3564_v7  ;;  %vm1949_vm11 = vcmp.eq.s32.totalorder %v3787_v49, %v3509_v43 }
  0xfc   :  { %3204 = vmatmul.mubr.msk.f32.gmra.mrb[6].mxu0 %vm338_vm0, %v3614_v30  ;;  %3209 = vmatmul.mubr.msk.f32.vlgmr.msra.gmra.mrb[4].mxu1 %vm338_vm0, %v3600_v25 }
  0xfd   :  { %3211 = vmatprep.mubr.msk.f32.mxu1 %vm338_vm0, %v3626_v35  ;;  %3216 = vmatprep.mubr.msk.f32.mxu0 %vm338_vm0, %v3638_v38 }
  0xfe   :  { %3223 = vmatpush3.msra.mxu1 %v3516_v50  ;;  %v1805_v50 = vpop.permute.xlu1 %1804  ;;  %v1820_v52 = vpop.permute.xlu0 %1819 }
  0xff   :  { %3238 = vmatprep.subr.mxu1 %v3585_v18  ;;  %vm1951_vm4 = vcmp.eq.s32.totalorder %v1820_v52, %v3509_v43 }
 0x100   :  { %3212 = vmatmul.mubr.msk.f32.gmra.mrb[6].mxu1 %vm338_vm0, %v3629_v37  ;;  %3217 = vmatmul.mubr.msk.f32.vlgmr.msra.gmra.mrb[8].mxu0 %vm338_vm0, %v3641_v39 }
 0x101   :  { %3219 = vmatprep.mubr.msk.f32.mxu0 %vm338_vm0, %v3663_v47  ;;  %3224 = vmatprep.mubr.msk.f32.mxu1 %vm338_vm0, %v3650_v42 }
 0x102   :  { %3231 = vmatpush3.msra.mxu0 %v3564_v7  ;;  %v1813_v53 = vpop.permute.xlu1 %1812  ;;  %v1828_v58 = vpop.permute.xlu0 %1827 }
 0x103   :  { %vm1953_vm6 = vcmp.eq.s32.totalorder %v1828_v58, %v3509_v43  ;;  %vm1950_vm8 = vcmp.eq.s32.totalorder %v1813_v53, %v3509_v43 }
 0x104   :  { %3220 = vmatmul.mubr.msk.f32.gmra.mrb[10].mxu0 %vm338_vm0, %v3666_v48  ;;  %3225 = vmatmul.mubr.msk.f32.vlgmr.msra.gmra.mrb[8].mxu1 %vm338_vm0, %v3653_v44 }
 0x105   :  { %3227 = vmatprep.mubr.msk.f32.mxu1 %vm338_vm0, %v3676_v56  ;;  %3232 = vmatprep.mubr.msk.f32.mxu0 %vm338_vm0, %v3688_v62 }
 0x106   :  { %3239 = vmatpush3.msra.mxu1 %v3585_v18  ;;  %v1824_v59 = vpop.permute.xlu1 %1823  ;;  %v1839_v0 = vpop.permute.xlu0 %1838 }
 0x107   :  { %vm1952_vm3 = vcmp.eq.s32.totalorder %v1824_v59, %v3509_v43  ;;  %vm1955_vm7 = vcmp.eq.s32.totalorder %v1839_v0, %v3509_v43 }
 0x108   :  { %3228 = vmatmul.mubr.msk.f32.gmra.mrb[10].mxu1 %vm338_vm0, %v3679_v57  ;;  %3233 = vmatmul.mubr.msk.f32.vlgmr.msra.gmra.mrb[12].mxu0 %vm338_vm0, %v3691_v63 }
 0x109   :  { %3235 = vmatprep.mubr.msk.f32.mxu0 %vm338_vm0, %v2959_v13  ;;  %3240 = vmatprep.mubr.msk.f32.mxu1 %vm338_vm0, %v2961_v5 }
 0x10a   :  { %v1832_v2 = vpop.permute.xlu1 %1831  ;;  %v3789_v7 = vpop.permute.xlu0 %1846 }
 0x10b   :  { %vm1954_vm9 = vcmp.eq.s32.totalorder %v1832_v2, %v3509_v43  ;;  %vm1957_vm12 = vcmp.eq.s32.totalorder %v3789_v7, %v3509_v43 }
 0x10c   :  { %3236 = vmatmul.mubr.msk.f32.gmra.mrb[14].mxu0 %vm338_vm0, %v2960_v12  ;;  %3241 = vmatmul.mubr.msk.f32.vlgmr.msra.gmra.mrb[12].mxu1 %vm338_vm0, %v2962_v6 }
 0x10d   :  { %3243 = vmatprep.mubr.msk.f32.mxu1 %vm338_vm0, %v2963_v14 }
 0x10e   :  { %v3791_v8 = vpop.permute.xlu1 %1842  ;;  %v1858_v9 = vpop.permute.xlu0 %1857 }
 0x10f   :  { %vm1959_vm10 = vcmp.eq.s32.totalorder %v1858_v9, %v3509_v43  ;;  %vm1956_vm13 = vcmp.eq.s32.totalorder %v3791_v8, %v3509_v43 }
 0x110   :  { %3244 = vmatmul.mubr.msk.f32.gmra.mrb[14].mxu1 %vm338_vm0, %v2964_v21  ;;  %vm1948_vm0 = vcmp.eq.s32.totalorder %v1805_v50, %v3509_v43 }
 0x112   :  { %v3793_v16 = vpop.permute.xlu1 %1850  ;;  %v3795_v17 = vpop.permute.xlu0 %1865 }
 0x113   :  { %vm1961_vm14 = vcmp.eq.s32.totalorder %v3795_v17, %v3509_v43  ;;  %vm1958_vm2 = vcmp.eq.s32.totalorder %v3793_v16, %v3509_v43 }
 0x116   :  { %v3798_v23 = vpop.permute.xlu1 %1861  ;;  %v3801_v26 = vpop.permute.xlu0 %1876 }
 0x117   :  { %vm1960_vm15 = vcmp.eq.s32.totalorder %v3798_v23, %v3509_v43  ;;  %vm1963_vm1 = vcmp.eq.s32.totalorder %v3801_v26, %v3509_v43 }
 0x11a   :  { %v3805_v33 = vpop.permute.xlu1 %1869  ;;  %v3808_v40 = vpop.permute.xlu0 %1884 }
 0x11e   :  { %v3813_v48 = vpop.permute.xlu1 %1880  ;;  %v1896_v62 = vpop.permute.xlu0 %1895 }
 0x122   :  { %v1889_v11 = vpop.permute.xlu1 %1888  ;;  %v1904_v21 = vpop.permute.xlu0 %1903 }
 0x126   :  { %v1900_v59 = vpop.permute.xlu1 %1899  ;;  %v1915_v0 = vpop.permute.xlu0 %1914 }
 0x12a   :  { %v1908_v17 = vpop.permute.xlu1 %1907  ;;  %v1923_v16 = vpop.permute.xlu0 %1922 }
 0x12e   :  { %v1919_v26 = vpop.permute.xlu1 %1918 }
 0x1c3   :  { %v3186_v18 = vpop.f32.mrb[0].mxu0 }
 0x1c4   :  { %v1181_v24 = vpop.f32.mrb[1].mxu0  ;;  %v1980_v25 = vsel %vm1948_vm0, %v3186_v18, 0.0  ;;  %vm1967_vm0 = vcmp.eq.s32.totalorder %v1896_v62, %v3509_v43 }
 0x1c5   :  { %2013 = vadd.xlane.f32.xlu1 %v1980_v25  ;;  %v1979_v38 = vsel %vm1947_vm5, %v1181_v24, 0.0  ;;  %vm1964_vm5 = vcmp.eq.s32.totalorder %v3813_v48, %v3509_v43 }
 0x1c7   :  { %v3189_v27 = vpop.f32.mrb[2].mxu0  ;;  %v3194_v28 = vpop.f32.mrb[0].mxu1 }
 0x1c8   :  { %v1191_v29 = vpop.f32.mrb[3].mxu0  ;;  %v1266_v30 = vpop.f32.mrb[1].mxu1  ;;  %v1984_v31 = vsel %vm1952_vm3, %v3194_v28, 0.0  ;;  %v1982_v46 = vsel %vm1950_vm8, %v3189_v27, 0.0  ;;  %vm1962_vm3 = vcmp.eq.s32.totalorder %v3805_v33, %v3509_v43  ;;  %vm1971_vm8 = vcmp.eq.s32.totalorder %v1915_v0, %v3509_v43 }
 0x1c9   :  { %2021 = vadd.xlane.f32.xlu0 %v1984_v31  ;;  %v1983_v32 = vsel %vm1951_vm4, %v1266_v30, 0.0  ;;  %v1981_v6 = vsel %vm1949_vm11, %v1191_v29, 0.0  ;;  %vm1965_vm4 = vcmp.eq.s32.totalorder %v3808_v40, %v3509_v43  ;;  %v1934_v27 = vpop.permute.xlu0 %1933  ;;  %v1927_v30 = vpop.permute.xlu1 %1926  ;;  %vm1970_vm11 = vcmp.eq.s32.totalorder %v1908_v17, %v3509_v43  ;;  %v3870_v17 = vld [vmem:[#allocation6 + $0x14] sm:$0xf] }
 0x1ca   :  { %2019 = vadd.xlane.f32.xlu1 %v1983_v32 }
 0x1cb   :  { %v3197_v35 = vpop.f32.mrb[2].mxu1  ;;  %v3202_v37 = vpop.f32.mrb[4].mxu0 }
 0x1cc   :  { %v1276_v34 = vpop.f32.mrb[3].mxu1  ;;  %v1351_v36 = vpop.f32.mrb[5].mxu0  ;;  %v1986_v60 = vsel %vm1954_vm9, %v3197_v35, 0.0  ;;  %v1988_v14 = vsel %vm1956_vm13, %v3202_v37, 0.0  ;;  %vm1966_vm9 = vcmp.eq.s32.totalorder %v1889_v11, %v3509_v43  ;;  %vm1972_vm13 = vcmp.eq.s32.totalorder %v1919_v26, %v3509_v43  ;;  %v3882_v26 = vld [vmem:[#allocation6 + $0x10] sm:$0xf] }
 0x1cd   :  { %2011 = vadd.xlane.f32.xlu0 %v1979_v38  ;;  %v1985_v39 = vsel %vm1953_vm6, %v1276_v34, 0.0  ;;  %v1987_v47 = vsel %vm1955_vm7, %v1351_v36, 0.0  ;;  %vm1969_vm6 = vcmp.eq.s32.totalorder %v1904_v21, %v3509_v43  ;;  %vm1968_vm7 = vcmp.eq.s32.totalorder %v1900_v59, %v3509_v43  ;;  %v1942_v33 = vpop.permute.xlu0 %1941  ;;  %v1938_v34 = vpop.permute.xlu1 %1937  ;;  %v3858_v59 = vld [vmem:[#allocation6] sm:$0xf] }
 0x1ce   :  { %2023 = vadd.xlane.f32.xlu1 %v1985_v39 }
 0x1cf   :  { %v3205_v41 = vpop.f32.mrb[6].mxu0  ;;  %v3210_v42 = vpop.f32.mrb[4].mxu1 }
 0x1d0   :  { %v1361_v44 = vpop.f32.mrb[7].mxu0  ;;  %v1436_v45 = vpop.f32.mrb[5].mxu1  ;;  %v1992_v53 = vsel %vm1960_vm15, %v3210_v42, 0.0  ;;  %v1990_v8 = vsel %vm1958_vm2, %v3205_v41, 0.0  ;;  %vm1976_vm15 = vcmp.eq.s32.totalorder %v1938_v34, %v3509_v43 }
 0x1d1   :  { %2017 = vadd.xlane.f32.xlu0 %v1982_v46  ;;  %v1991_v61 = vsel %vm1959_vm10, %v1436_v45, 0.0  ;;  %v1989_v10 = vsel %vm1957_vm12, %v1361_v44, 0.0  ;;  %vm1975_vm10 = vcmp.eq.s32.totalorder %v1934_v27, %v3509_v43  ;;  %vm1973_vm12 = vcmp.eq.s32.totalorder %v1923_v16, %v3509_v43  ;;  %v1946_v40 = vpop.permute.xlu1 %1945  ;;  %v3874_v16 = vld [vmem:[#allocation6 + $0x1c] sm:$0xf] }
 0x1d2   :  { %2027 = vadd.xlane.f32.xlu1 %v1987_v47  ;;  %vm1978_vm2 = vcmp.eq.s32.totalorder %v1946_v40, %v3509_v43 }
 0x1d3   :  { %v3213_v54 = vpop.f32.mrb[6].mxu1  ;;  %v3218_v55 = vpop.f32.mrb[8].mxu0 }
 0x1d4   :  { %v1446_v56 = vpop.f32.mrb[7].mxu1  ;;  %v1521_v57 = vpop.f32.mrb[9].mxu0  ;;  %v1994_v18 = vsel %vm1962_vm3, %v3213_v54, 0.0  ;;  %v1996_v24 = vsel %vm1964_vm5, %v3218_v55, 0.0  ;;  %vm2331_vm3 = vcmask 1041409   ;;  %vm2335_vm5 = vcmask 1043459  }
 0x1d5   :  { %2025 = vadd.xlane.f32.xlu0 %v1986_v60  ;;  %v1993_v19 = vsel %vm1961_vm14, %v1446_v56, 0.0  ;;  %v1995_v58 = vsel %vm1963_vm1, %v1521_v57, 0.0  ;;  %vm1977_vm14 = vcmp.eq.s32.totalorder %v1942_v33, %v3509_v43  ;;  %vm1974_vm1 = vcmp.eq.s32.totalorder %v1927_v30, %v3509_v43 }
 0x1d6   :  { %2035 = vadd.xlane.f32.xlu1 %v1991_v61 }
 0x1d7   :  { %v3820_v63 = vpop.f32.mrb[10].mxu0  ;;  %v3226_v3 = vpop.f32.mrb[8].mxu1 }
 0x1d8   :  { %v1531_v4 = vpop.f32.mrb[11].mxu0  ;;  %v1606_v5 = vpop.f32.mrb[9].mxu1  ;;  %v2000_v28 = vsel %vm1968_vm7, %v3226_v3, 0.0  ;;  %v1998_v31 = vsel %vm1966_vm9, %v3820_v63, 0.0  ;;  %vm2339_vm7 = vcmask 1045509   ;;  %vm2343_vm9 = vcmask 1047559  }
 0x1d9   :  { %2015 = vadd.xlane.f32.xlu0 %v1981_v6  ;;  %v1999_v9 = vsel %vm1967_vm0, %v1606_v5, 0.0  ;;  %v1997_v23 = vsel %vm1965_vm4, %v1531_v4, 0.0  ;;  %vm2446_vm0 = vcmask 60416   ;;  %vm2333_vm4 = vcmask 1042434  }
 0x1da   :  { %2031 = vadd.xlane.f32.xlu1 %v1989_v10  ;;  %v2447_v0 = vsel %vm2446_vm0, %v3858_v59, 0.0  ;;  %v2459_v27 = vsel %vm2446_vm0, %v3882_v26, 0.0 }
 0x1db   :  { %v3229_v13 = vpop.f32.mrb[10].mxu1  ;;  %v3826_v12 = vpop.f32.mrb[12].mxu0 }
 0x1dc   :  { %v1616_v15 = vpop.f32.mrb[11].mxu1  ;;  %v1691_v20 = vpop.f32.mrb[13].mxu0  ;;  %v2002_v35 = vsel %vm1970_vm11, %v3229_v13, 0.0  ;;  %v2004_v36 = vsel %vm1972_vm13, %v3826_v12, 0.0 }
 0x1dd   :  { %2029 = vadd.xlane.f32.xlu0 %v1988_v14  ;;  %v2001_v25 = vsel %vm1969_vm6, %v1616_v15, 0.0  ;;  %v2003_v29 = vsel %vm1971_vm8, %v1691_v20, 0.0  ;;  %vm2337_vm6 = vcmask 1044484   ;;  %vm2341_vm8 = vcmask 1046534  }
 0x1de   :  { %2039 = vadd.xlane.f32.xlu1 %v1993_v19 }
 0x1df   :  { %v3832_v22 = vpop.f32.mrb[14].mxu0  ;;  %v3242_v49 = vpop.f32.mrb[12].mxu1 }
 0x1e0   :  { %v1701_v50 = vpop.f32.mrb[15].mxu0  ;;  %v1776_v52 = vpop.f32.mrb[13].mxu1  ;;  %v2008_v39 = vsel %vm1976_vm15, %v3242_v49, 0.0  ;;  %v2006_v41 = vsel %vm1974_vm1, %v3832_v22, 0.0 }
 0x1e1   :  { %2037 = vadd.xlane.f32.xlu0 %v1992_v53  ;;  %v2007_v32 = vsel %vm1975_vm10, %v1776_v52, 0.0  ;;  %v2005_v37 = vsel %vm1973_vm12, %v1701_v50, 0.0 }
 0x1e2   :  { %2043 = vadd.xlane.f32.xlu1 %v1995_v58 }
 0x1e3   :  { %v3245_v2 = vpop.f32.mrb[14].mxu1 }
 0x1e4   :  { %v1786_v7 = vpop.f32.mrb[15].mxu1  ;;  %v2010_v42 = vsel %vm1978_vm2, %v3245_v2, 0.0  ;;  %v3862_v2 = vld [vmem:[#allocation6 + $0x8] sm:$0xf]  ;;  %vm2841_vm2 = vcmask 27648  }
 0x1e5   :  { %2033 = vadd.xlane.f32.xlu0 %v1990_v8  ;;  %v2009_v38 = vsel %vm1977_vm14, %v1786_v7, 0.0  ;;  %v2453_v7 = vsel %vm2446_vm0, %v3862_v2, 0.0  ;;  %v3866_v8 = vld [vmem:[#allocation6 + $0xc] sm:$0xf] }
 0x1e6   :  { %2051 = vadd.xlane.f32.xlu1 %v1999_v9  ;;  %v2456_v9 = vsel %vm2446_vm0, %v3866_v8, 0.0 }
 0x1e9   :  { %2041 = vadd.xlane.f32.xlu0 %v1994_v18  ;;  %v2462_v18 = vsel %vm2446_vm0, %v3870_v17, 0.0 }
 0x1ea   :  { %2047 = vadd.xlane.f32.xlu1 %v1997_v23  ;;  %v2468_v23 = vsel %vm2446_vm0, %v3874_v16, 0.0 }
 0x1ed   :  { %2045 = vadd.xlane.f32.xlu0 %v1996_v24  ;;  %v3878_v24 = vld [vmem:[#allocation6 + $0x4] sm:$0xf] }
 0x1ee   :  { %2055 = vadd.xlane.f32.xlu1 %v2001_v25  ;;  %v2450_v25 = vsel %vm2446_vm0, %v3878_v24, 0.0 }
 0x1f1   :  { %2053 = vadd.xlane.f32.xlu0 %v2000_v28  ;;  %v3886_v28 = vld [vmem:[#allocation6 + $0x18] sm:$0xf] }
 0x1f2   :  { %2059 = vadd.xlane.f32.xlu1 %v2003_v29  ;;  %v2465_v29 = vsel %vm2446_vm0, %v3886_v28, 0.0 }
 0x1f5   :  { %2049 = vadd.xlane.f32.xlu0 %v1998_v31  ;;  %v3892_v31 = vsub.s32 %v3509_v43, %v3456_v1 }
 0x1f6   :  { %2067 = vadd.xlane.f32.xlu1 %v2007_v32 }
 0x1f9   :  { %2057 = vadd.xlane.f32.xlu0 %v2002_v35 }
 0x1fa   :  { %2063 = vadd.xlane.f32.xlu1 %v2005_v37 }
 0x1fd   :  { %2061 = vadd.xlane.f32.xlu0 %v2004_v36 }
 0x1fe   :  { %2071 = vadd.xlane.f32.xlu1 %v2009_v38 }
 0x201   :  { %2069 = vadd.xlane.f32.xlu0 %v2008_v39 }
 0x205   :  { %2065 = vadd.xlane.f32.xlu0 %v2006_v41 }
 0x209   :  { %2073 = vadd.xlane.f32.xlu0 %v2010_v42 }
 0x252   :  { %v2014_v44 = vpop.xlane.xlu1 %2013 }
 0x253   :  { %2132 = vperm.xlu1 %3289, %v2014_v44  }
 0x256   :  { %v2022_v45 = vpop.xlane.xlu0 %2021 }
 0x257   :  { %v2020_v46 = vpop.xlane.xlu1 %2019  ;;  %2135 = vperm.xlu1 %3289, %v2022_v45  }
 0x258   :  { %2111 = vperm.xlu0 %3290, %v2020_v46  }
 0x25a   :  { %v2012_v47 = vpop.xlane.xlu0 %2011 }
 0x25b   :  { %v2024_v48 = vpop.xlane.xlu1 %2023  ;;  %2108 = vperm.xlu1 %3289, %v2012_v47  }
 0x25e   :  { %v2018_v54 = vpop.xlane.xlu0 %2017 }
 0x25f   :  { %v2028_v55 = vpop.xlane.xlu1 %2027  ;;  %2180 = vperm.xlu1 %3289, %v2018_v54  }
 0x262   :  { %v2026_v56 = vpop.xlane.xlu0 %2025 }
 0x263   :  { %v2036_v57 = vpop.xlane.xlu1 %2035  ;;  %2183 = vperm.xlu1 %3289, %v2026_v56  }
 0x264   :  { %2117 = vperm.xlu0 %3290, %v2036_v57  }
 0x266   :  { %v2016_v60 = vpop.xlane.xlu0 %2015 }
 0x267   :  { %v2032_v61 = vpop.xlane.xlu1 %2031  ;;  %2156 = vperm.xlu1 %3289, %v2016_v60  }
 0x268   :  { %2162 = vperm.xlu0 %3290, %v2032_v61  }
 0x26a   :  { %v2030_v62 = vpop.xlane.xlu0 %2029 }
 0x26b   :  { %v2040_v63 = vpop.xlane.xlu1 %2039  ;;  %2159 = vperm.xlu1 %3289, %v2024_v48  }
 0x26c   :  { %2165 = vperm.xlu0 %3290, %v2040_v63  }
 0x26e   :  { %v2038_v3 = vpop.xlane.xlu0 %2037 }
 0x26f   :  { %v2044_v4 = vpop.xlane.xlu1 %2043  ;;  %2138 = vperm.xlu1 %3289, %v2030_v62  }
 0x270   :  { %2120 = vperm.xlu0 %3290, %v2044_v4  }
 0x272   :  { %v2034_v5 = vpop.xlane.xlu0 %2033 }
 0x273   :  { %v2052_v6 = vpop.xlane.xlu1 %2051  ;;  %2141 = vperm.xlu1 %3289, %v2038_v3  }
 0x274   :  { %2123 = vperm.xlu0 %3290, %v2052_v6   ;;  %v3390_v6 = vmov 1983009808  }
 0x276   :  { %v2042_v10 = vpop.xlane.xlu0 %2041 }
 0x277   :  { %v2048_v11 = vpop.xlane.xlu1 %2047  ;;  %2114 = vperm.xlu1 %3289, %v2028_v55  }
 0x278   :  { %2168 = vperm.xlu0 %3290, %v2048_v11  }
 0x27a   :  { %v2046_v13 = vpop.xlane.xlu0 %2045 }
 0x27b   :  { %v2056_v12 = vpop.xlane.xlu1 %2055  ;;  %2186 = vperm.xlu1 %3289, %v2034_v5  }
 0x27c   :  { %2171 = vperm.xlu0 %3290, %v2056_v12  }
 0x27e   :  { %v2054_v15 = vpop.xlane.xlu0 %2053 }
 0x27f   :  { %v2060_v20 = vpop.xlane.xlu1 %2059  ;;  %2189 = vperm.xlu1 %3289, %v2042_v10   ;;  %v2373_v10 = vunpack.c.l.s4 %v3390_v6 }
 0x280   :  { %2126 = vperm.xlu0 %3290, %v2060_v20  }
 0x282   :  { %v2050_v14 = vpop.xlane.xlu0 %2049 }
 0x283   :  { %v2068_v21 = vpop.xlane.xlu1 %2067  ;;  %2144 = vperm.xlu1 %3289, %v2046_v13  }
 0x284   :  { %2129 = vperm.xlu0 %3290, %v2068_v21  }
 0x286   :  { %v2058_v19 = vpop.xlane.xlu0 %2057 }
 0x287   :  { %v2064_v22 = vpop.xlane.xlu1 %2063  ;;  %2147 = vperm.xlu1 %3289, %v2054_v15  }
 0x288   :  { %2174 = vperm.xlu0 %3290, %v2064_v22  }
 0x28a   :  { %v2062_v50 = vpop.xlane.xlu0 %2061 }
 0x28b   :  { %v2072_v49 = vpop.xlane.xlu1 %2071  ;;  %2192 = vperm.xlu1 %3289, %v2050_v14  }
 0x28c   :  { %2177 = vperm.xlu0 %3290, %v2072_v49   ;;  %v2374_v49 = vunpack.c.0.s8 %v2373_v10 }
 0x28e   :  { %v2070_v52 = vpop.xlane.xlu0 %2069 }
 0x28f   :  { %2195 = vperm.xlu1 %3289, %v2058_v19  }
 0x292   :  { %v2066_v53 = vpop.xlane.xlu0 %2065 }
 0x293   :  { %2150 = vperm.xlu1 %3289, %v2062_v50  }
 0x296   :  { %v2074_v58 = vpop.xlane.xlu0 %2073 }
 0x297   :  { %2153 = vperm.xlu1 %3289, %v2070_v52  }
 0x29b   :  { %2198 = vperm.xlu1 %3289, %v2066_v53  }
 0x29f   :  { %2201 = vperm.xlu1 %3289, %v2074_v58  }
 0x2ab   :  { %2448 = vadd.xlane.f32.xlu0 %v2447_v0 }
 0x2af   :  { %2454 = vadd.xlane.f32.xlu0 %v2453_v7 }
 0x2b3   :  { %2457 = vadd.xlane.f32.xlu0 %v2456_v9 }
 0x2b7   :  { %2463 = vadd.xlane.f32.xlu0 %v2462_v18 }
 0x2bb   :  { %2469 = vadd.xlane.f32.xlu0 %v2468_v23 }
 0x2c3   :  { %2451 = vadd.xlane.f32.xlu1 %v2450_v25 }
 0x2c7   :  { %2460 = vadd.xlane.f32.xlu1 %v2459_v27 }
 0x2cb   :  { %2466 = vadd.xlane.f32.xlu1 %v2465_v29  ;;  %v2377_v29 = vsub.s32 %v2374_v49, %v3456_v1 }
 0x2d2   :  { %v2133_v30 = vpop.permute.xlu1 %2132 }
 0x2d3   :  { %v2238_v33 = vrot.slane %v2133_v30, %v3892_v31 }
 0x2d6   :  { %v2136_v32 = vpop.permute.xlu1 %2135 }
 0x2d7   :  { %v2242_v35 = vrot.slane %v2136_v32, %v3892_v31  ;;  %v2112_v38 = vpop.permute.xlu0 %2111 }
 0x2d8   :  { %v2210_v14 = vrot.slane %v2112_v38, %v3892_v31 }
 0x2d9   :  { %v3897_v37 = vsel %vm2331_vm3, %v2242_v35, %v2238_v33  ;;  %v3391_v33 = vmov 1934713408  }
 0x2da   :  { %v2109_v34 = vpop.permute.xlu1 %2108  ;;  %v2405_v35 = vunpack.c.l.s4 %v3391_v33 }
 0x2db   :  { %v2206_v13 = vrot.slane %v2109_v34, %v3892_v31 }
 0x2dd   :  { %v2332_v52 = vsel %vm2331_vm3, %v2210_v14, %v2206_v13 }
 0x2de   :  { %v2181_v36 = vpop.permute.xlu1 %2180 }
 0x2df   :  { %v2302_v58 = vrot.slane %v2181_v36, %v3892_v31 }
 0x2e2   :  { %v2184_v39 = vpop.permute.xlu1 %2183 }
 0x2e3   :  { %v2118_v40 = vpop.permute.xlu0 %2117  ;;  %v2306_v19 = vrot.slane %v2184_v39, %v3892_v31 }
 0x2e4   :  { %v2218_v18 = vrot.slane %v2118_v40, %v3892_v31 }
 0x2e5   :  { %v2359_v27 = vsel %vm2331_vm3, %v2306_v19, %v2302_v58 }
 0x2e6   :  { %v2157_v41 = vpop.permute.xlu1 %2156 }
 0x2e7   :  { %v2163_v42 = vpop.permute.xlu0 %2162  ;;  %v2270_v12 = vrot.slane %v2157_v41, %v3892_v31 }
 0x2e8   :  { %v2278_v22 = vrot.slane %v2163_v42, %v3892_v31 }
 0x2ea   :  { %v2160_v44 = vpop.permute.xlu1 %2159 }
 0x2eb   :  { %v2166_v45 = vpop.permute.xlu0 %2165  ;;  %v2274_v5 = vrot.slane %v2160_v44, %v3892_v31 }
 0x2ec   :  { %v2282_v53 = vrot.slane %v2166_v45, %v3892_v31 }
 0x2ed   :  { %v2352_v21 = vsel %vm2331_vm3, %v2274_v5, %v2270_v12 }
 0x2ee   :  { %v2139_v43 = vpop.permute.xlu1 %2138  ;;  %v2353_v0 = vsel %vm2333_vm4, %v2278_v22, %v2352_v21  ;;  %v2406_v21 = vunpack.c.0.s8 %v2405_v35 }
 0x2ef   :  { %v2121_v46 = vpop.permute.xlu0 %2120  ;;  %v2246_v7 = vrot.slane %v2139_v43, %v3892_v31  ;;  %v2354_v34 = vsel %vm2335_vm5, %v2282_v53, %v2353_v0 }
 0x2f0   :  { %v2222_v36 = vrot.slane %v2121_v46, %v3892_v31 }
 0x2f1   :  { %v2346_v40 = vsel %vm2333_vm4, %v2246_v7, %v3897_v37 }
 0x2f2   :  { %v2142_v47 = vpop.permute.xlu1 %2141 }
 0x2f3   :  { %v3899_v48 = vpop.permute.xlu0 %2123  ;;  %v2250_v23 = vrot.slane %v2142_v47, %v3892_v31 }
 0x2f4   :  { %v2226_v41 = vrot.slane %v3899_v48, %v3892_v31 }
 0x2f5   :  { %v2347_v45 = vsel %vm2335_vm5, %v2250_v23, %v2346_v40 }
 0x2f6   :  { %v2115_v54 = vpop.permute.xlu1 %2114 }
 0x2f7   :  { %v2169_v55 = vpop.permute.xlu0 %2168  ;;  %v2214_v15 = vrot.slane %v2115_v54, %v3892_v31 }
 0x2f8   :  { %v2286_v25 = vrot.slane %v2169_v55, %v3892_v31 }
 0x2f9   :  { %v2334_v9 = vsel %vm2333_vm4, %v2214_v15, %v2332_v52 }
 0x2fa   :  { %v3901_v56 = vpop.permute.xlu1 %2186  ;;  %v2336_v38 = vsel %vm2335_vm5, %v2218_v18, %v2334_v9  ;;  %v2355_v43 = vsel %vm2337_vm6, %v2286_v25, %v2354_v34  ;;  %v2409_v25 = vsub.s32 %v2406_v21, %v3456_v1 }
 0x2fb   :  { %v2172_v57 = vpop.permute.xlu0 %2171  ;;  %v2310_v42 = vrot.slane %v3901_v56, %v3892_v31  ;;  %v2338_v54 = vsel %vm2337_vm6, %v2222_v36, %v2336_v38 }
 0x2fc   :  { %v2290_v39 = vrot.slane %v2172_v57, %v3892_v31  ;;  %v2340_v12 = vsel %vm2339_vm7, %v2226_v41, %v2338_v54 }
 0x2fe   :  { %v3903_v60 = vpop.permute.xlu1 %2189  ;;  %v2356_v57 = vsel %vm2339_vm7, %v2290_v39, %v2355_v43 }
 0x2ff   :  { %v3907_v62 = vpop.permute.xlu0 %2126  ;;  %v2314_v46 = vrot.slane %v3903_v60, %v3892_v31 }
 0x300   :  { %v2230_v37 = vrot.slane %v3907_v62, %v3892_v31  ;;  %v2360_v62 = vsel %vm2333_vm4, %v2310_v42, %v2359_v27 }
 0x301   :  { %v2361_v13 = vsel %vm2335_vm5, %v2314_v46, %v2360_v62 }
 0x302   :  { %v3905_v61 = vpop.permute.xlu1 %2144 }
 0x303   :  { %v3911_v3 = vpop.permute.xlu0 %2129  ;;  %v2254_v48 = vrot.slane %v3905_v61, %v3892_v31 }
 0x304   :  { %v2234_v5 = vrot.slane %v3911_v3, %v3892_v31 }
 0x306   :  { %v3909_v63 = vpop.permute.xlu1 %2147 }
 0x307   :  { %v2175_v20 = vpop.permute.xlu0 %2174  ;;  %v2258_v60 = vrot.slane %v3909_v63, %v3892_v31  ;;  %v2342_v63 = vsel %vm2341_vm8, %v2230_v37, %v2340_v12 }
 0x308   :  { %v2294_v44 = vrot.slane %v2175_v20, %v3892_v31  ;;  %v2344_v19 = vsel %vm2343_vm9, %v2234_v5, %v2342_v63 }
 0x30a   :  { %v3913_v4 = vpop.permute.xlu1 %2192  ;;  %v2357_v10 = vsel %vm2341_vm8, %v2294_v44, %v2356_v57 }
 0x30b   :  { %v2178_v30 = vpop.permute.xlu0 %2177  ;;  %v2318_v55 = vrot.slane %v3913_v4, %v3892_v31 }
 0x30c   :  { %v2298_v47 = vrot.slane %v2178_v30, %v3892_v31 }
 0x30d   :  { %v2362_v20 = vsel %vm2337_vm6, %v2318_v55, %v2361_v13 }
 0x30e   :  { %v3916_v11 = vpop.permute.xlu1 %2195  ;;  %v2358_v3 = vsel %vm2343_vm9, %v2298_v47, %v2357_v10 }
 0x30f   :  { %v2322_v6 = vrot.slane %v3916_v11, %v3892_v31  ;;  %v2348_v11 = vsel %vm2337_vm6, %v2254_v48, %v2347_v45  ;;  %v2370_v52 = vcombine.low %v2344_v19, %v2358_v3  ;;  %v2371_v53 = vcombine.high %v2344_v19, %v2358_v3 }
 0x310   :  { %v2349_v22 = vsel %vm2339_vm7, %v2258_v60, %v2348_v11 }
 0x311   :  { %v2363_v49 = vsel %vm2339_vm7, %v2322_v6, %v2362_v20  ;;  %v2378_v27 = vrot.slane %v2370_v52, %v2377_v29  ;;  %v2385_v30 = vrot.slane %v2371_v53, %v2377_v29 }
 0x312   :  { %v2151_v50 = vpop.permute.xlu1 %2150 }
 0x313   :  { %v2262_v61 = vrot.slane %v2151_v50, %v3892_v31 }
 0x315   :  { %v2350_v58 = vsel %vm2341_vm8, %v2262_v61, %v2349_v22 }
 0x316   :  { %v2154_v32 = vpop.permute.xlu1 %2153 }
 0x317   :  { %v2266_v15 = vrot.slane %v2154_v32, %v3892_v31 }
 0x319   :  { %v2351_v7 = vsel %vm2343_vm9, %v2266_v15, %v2350_v58 }
 0x31a   :  { %v2199_v56 = vpop.permute.xlu1 %2198 }
 0x31b   :  { %v2326_v4 = vrot.slane %v2199_v56, %v3892_v31 }
 0x31d   :  { %v2364_v0 = vsel %vm2341_vm8, %v2326_v4, %v2363_v49 }
 0x31e   :  { %v2202_v14 = vpop.permute.xlu1 %2201 }
 0x31f   :  { %v2330_v50 = vrot.slane %v2202_v14, %v3892_v31 }
 0x321   :  { %v2365_v9 = vsel %vm2343_vm9, %v2330_v50, %v2364_v0 }
 0x322   :  { %v2386_v18 = vcombine.low %v2351_v7, %v2365_v9  ;;  %v2387_v23 = vcombine.high %v2351_v7, %v2365_v9 }
 0x324   :  { %v2394_v32 = vrot.slane %v2386_v18, %v2377_v29  ;;  %v2401_v33 = vrot.slane %v2387_v23, %v2377_v29 }
 0x326   :  { %v2402_v35 = vcombine.low %v2378_v27, %v2394_v32  ;;  %v2403_v34 = vcombine.high %v2378_v27, %v2394_v32  ;;  %v2418_v36 = vcombine.low %v2385_v30, %v2401_v33  ;;  %v2419_v40 = vcombine.high %v2385_v30, %v2401_v33 }
 0x328   :  { %v3986_v38 = vrot.slane %v2402_v35, %v2409_v25  ;;  %v3988_v39 = vrot.slane %v2403_v34, %v2409_v25  ;;  %v4000_v29 = vrot.slane %v2418_v36, %v2409_v25  ;;  %v4014_v37 = vrot.slane %v2419_v40, %v2409_v25 }
 0x32a   :  { %v2495_v41 = vmul.f32 %v3858_v59, %v3986_v38  ;;  %v3994_v42 = vcombine.high %v3986_v38, %v3388_v51  ;;  %v3998_v1 = vcombine.high %v3988_v39, %v3388_v51  ;;  %v2497_v43 = vmul.f32 %v3862_v2, %v3988_v39 }
 0x32b   :  { %v4012_v54 = vcombine.high %v4000_v29, %v3388_v51  ;;  %v2499_v55 = vmul.f32 %v3882_v26, %v4000_v29  ;;  %v4024_v5 = vcombine.high %v4014_v37, %v3388_v51  ;;  %v2501_v6 = vmul.f32 %v3886_v28, %v4014_v37 }
 0x32c   :  { %v2503_v44 = vsel %vm2446_vm0, %v2495_v41, 0.0  ;;  %v2496_v45 = vmul.f32 %v3878_v24, %v3994_v42  ;;  %v2498_v47 = vmul.f32 %v3866_v8, %v3998_v1  ;;  %v2509_v48 = vsel %vm2446_vm0, %v2497_v43, 0.0 }
 0x32d   :  { %2504 = vadd.xlane.f32.xlu1 %v2503_v44  ;;  %v2500_v57 = vmul.f32 %v3870_v17, %v4012_v54  ;;  %v2515_v60 = vsel %vm2446_vm0, %v2499_v55, 0.0  ;;  %v2502_v10 = vmul.f32 %v3874_v16, %v4024_v5  ;;  %v2521_v61 = vsel %vm2446_vm0, %v2501_v6, 0.0 }
 0x32e   :  { %v2506_v46 = vsel %vm2446_vm0, %v2496_v45, 0.0  ;;  %v2512_v56 = vsel %vm2446_vm0, %v2498_v47, 0.0 }
 0x32f   :  { %2507 = vadd.xlane.f32.xlu0 %v2506_v46  ;;  %v2518_v62 = vsel %vm2446_vm0, %v2500_v57, 0.0  ;;  %v2524_v4 = vsel %vm2446_vm0, %v2502_v10, 0.0 }
 0x331   :  { %2510 = vadd.xlane.f32.xlu1 %v2509_v48 }
 0x333   :  { %2513 = vadd.xlane.f32.xlu0 %v2512_v56 }
 0x335   :  { %2516 = vadd.xlane.f32.xlu1 %v2515_v60 }
 0x337   :  { %2519 = vadd.xlane.f32.xlu0 %v2518_v62 }
 0x338   :  { %v2449_v13 = vpop.xlane.xlu0 %2448 }
 0x339   :  { %2522 = vadd.xlane.f32.xlu1 %v2521_v61  ;;  %v2527_v3 = vadd.f32 0.0001, %v2449_v13  ;;  %vm2471_vm10 = vcmp.ne.f32.partialorder %v2449_v13, 0.0 }
 0x33a   :  { %v4042_v33 = vsel %vm2471_vm10, 1.0, %v3388_v51 }
 0x33b   :  { %2525 = vadd.xlane.f32.xlu0 %v2524_v4  ;;  %3291 = vrcp.f32 %v2527_v3  ;;  %v4050_v45 = vrot.slane %v4042_v33, %v3892_v31 }
 0x33c   :  { %v2455_v12 = vpop.xlane.xlu0 %2454 }
 0x33d   :  { %v2529_v20 = vadd.f32 0.0001, %v2455_v12  ;;  %vm2473_vm11 = vcmp.ne.f32.partialorder %v2455_v12, 0.0 }
 0x33e   :  { %v4045_v35 = vsel %vm2473_vm11, 1.0, %v3388_v51  ;;  %vm2599_vm11 = vcmask 31744  }
 0x340   :  { %v2458_v11 = vpop.xlane.xlu0 %2457 }
 0x341   :  { %v2530_v14 = vadd.f32 0.0001, %v2458_v11  ;;  %vm2474_vm12 = vcmp.ne.f32.partialorder %v2458_v11, 0.0 }
 0x342   :  { %v4058_v48 = vsel %vm2474_vm12, 1.0, %v3388_v51 }
 0x344   :  { %v4034_v19 = vpop.xlane.xlu0 %2463 }
 0x345   :  { %v2532_v22 = vadd.f32 0.0001, %v4034_v19  ;;  %v3292_v52 = vpop.eup %3291  ;;  %vm2476_vm1 = vcmp.ne.f32.partialorder %v4034_v19, 0.0 }
 0x348   :  { %v4037_v58 = vpop.xlane.xlu0 %2469 }
 0x349   :  { %v2534_v0 = vadd.f32 0.0001, %v4037_v58  ;;  %vm2478_vm10 = vcmp.ne.f32.partialorder %v4037_v58, 0.0 }
 0x350   :  { %v2452_v15 = vpop.xlane.xlu1 %2451 }
 0x351   :  { %v2528_v63 = vadd.f32 0.0001, %v2452_v15  ;;  %vm2472_vm14 = vcmp.ne.f32.partialorder %v2452_v15, 0.0 }
 0x352   :  { %v4067_v15 = vsel %vm2472_vm14, 1.0, %v3388_v51 }
 0x353   :  { %3293 = vrcp.f32 %v2528_v63 }
 0x354   :  { %v2461_v21 = vpop.xlane.xlu1 %2460  ;;  %3295 = vrcp.f32 %v2529_v20 }
 0x355   :  { %3297 = vrcp.f32 %v2530_v14  ;;  %v2531_v49 = vadd.f32 0.0001, %v2461_v21  ;;  %vm2475_vm13 = vcmp.ne.f32.partialorder %v2461_v21, 0.0 }
 0x356   :  { %3299 = vrcp.f32 %v2532_v22  ;;  %v3033_v6 = vsel %vm2475_vm13, 1.0, %v3388_v51 }
 0x357   :  { %3301 = vrcp.f32 %v2531_v49  ;;  %v4073_v20 = vrot.slane %v3033_v6, %v3892_v31 }
 0x358   :  { %v2467_v50 = vpop.xlane.xlu1 %2466 }
 0x359   :  { %v2533_v53 = vadd.f32 0.0001, %v2467_v50  ;;  %vm2477_vm15 = vcmp.ne.f32.partialorder %v2467_v50, 0.0 }
 0x35b   :  { %3303 = vrcp.f32 %v2533_v53  ;;  %v3035_v53 = vsel %vm2477_vm15, 1.0, %v3388_v51 }
 0x35c   :  { %3305 = vrcp.f32 %v2534_v0 }
 0x35d   :  { %v3294_v7 = vpop.eup %3293 }
 0x35e   :  { %v3296_v25 = vpop.eup %3295 }
 0x35f   :  { %v3298_v32 = vpop.eup %3297 }
 0x360   :  { %v3300_v47 = vpop.eup %3299 }
 0x361   :  { %v3302_v60 = vpop.eup %3301 }
 0x365   :  { %v3304_v11 = vpop.eup %3303 }
 0x3ba   :  { %v2505_v9 = vpop.xlane.xlu1 %2504 }
 0x3bb   :  { %v2536_v18 = vmul.f32 %v3292_v52, %v2505_v9  ;;  %v3306_v52 = vpop.eup %3305 }
 0x3bc   :  { %v2508_v23 = vpop.xlane.xlu0 %2507 }
 0x3bd   :  { %v2603_v27 = vsub.f32 %v3986_v38, %v2536_v18  ;;  %v2538_v30 = vmul.f32 %v3294_v7, %v2508_v23  ;;  %v2716_v40 = vrot.slane %v2536_v18, %v3892_v31  ;;  %v4054_v38 = vrot.slane %v4045_v35, %v3892_v31 }
 0x3be   :  { %v2511_v34 = vpop.xlane.xlu1 %2510 }
 0x3bf   :  { %v2611_v36 = vmul.f32 %v2603_v27, %v2603_v27  ;;  %v2540_v41 = vmul.f32 %v3296_v25, %v2511_v34  ;;  %v2720_v43 = vrot.slane %v2538_v30, %v3892_v31  ;;  %v2769_v62 = vsub.f32 %v2536_v18, %v2716_v40 }
 0x3c0   :  { %v2514_v44 = vpop.xlane.xlu0 %2513 }
 0x3c1   :  { %v2542_v46 = vmul.f32 %v3298_v32, %v2514_v44  ;;  %v2605_v55 = vsub.f32 %v3988_v39, %v2540_v41  ;;  %v2619_v57 = vmul.f32 %v2611_v36, %v3858_v59  ;;  %v2724_v10 = vrot.slane %v2540_v41, %v3892_v31 }
 0x3c2   :  { %v2517_v56 = vpop.xlane.xlu1 %2516  ;;  %v2604_v39 = vsub.f32 %v3994_v42, %v2538_v30  ;;  %v2770_v59 = vsub.f32 %v2538_v30, %v2720_v43  ;;  %v2777_v42 = vand.u32 2147483647, %v2769_v62  ;;  %v2829_v44 = vmul.f32 %v3033_v6, %v4073_v20 }
 0x3c3   :  { %v2613_v61 = vmul.f32 %v2605_v55, %v2605_v55  ;;  %v2728_v4 = vrot.slane %v2542_v46, %v3892_v31  ;;  %v2544_v13 = vmul.f32 %v3302_v60, %v2517_v56  ;;  %v2627_v12 = vsel %vm2446_vm0, %v2619_v57, 0.0 }
 0x3c4   :  { %v2520_v3 = vpop.xlane.xlu0 %2519  ;;  %2628 = vadd.xlane.f32.xlu0 %v2627_v12  ;;  %v2771_v0 = vsub.f32 %v2540_v41, %v2724_v10  ;;  %v2778_v30 = vand.u32 2147483647, %v2770_v59  ;;  %v2606_v32 = vsub.f32 %v3998_v1, %v2542_v46  ;;  %v2566_v41 = vrot.slane %v4067_v15, %v3892_v31 }
 0x3c5   :  { %v4070_v63 = vmul.f32 %v3300_v47, %v2520_v3  ;;  %v2607_v14 = vsub.f32 %v4000_v29, %v2544_v13  ;;  %v2732_v21 = vrot.slane %v2544_v13, %v3892_v31  ;;  %v2621_v49 = vmul.f32 %v2613_v61, %v3862_v2 }
 0x3c6   :  { %v2523_v22 = vpop.xlane.xlu1 %2522  ;;  %v2772_v9 = vsub.f32 %v2542_v46, %v2728_v4  ;;  %v2612_v29 = vmul.f32 %v2604_v39, %v2604_v39  ;;  %v4095_v43 = vrot.slane %v3035_v53, %v3892_v31  ;;  %v2785_v1 = vsub.f32 1.0, %v2777_v42 }
 0x3c7   :  { %v4080_v7 = vmul.f32 %v3304_v11, %v2523_v22  ;;  %v2615_v18 = vmul.f32 %v2607_v14, %v2607_v14  ;;  %v2773_v23 = vsub.f32 %v2544_v13, %v2732_v21  ;;  %v2633_v25 = vsel %vm2446_vm0, %v2621_v49, 0.0 }
 0x3c8   :  { %v2526_v27 = vpop.xlane.xlu0 %2525  ;;  %v2736_v2 = vrot.slane %v4070_v63, %v3892_v31  ;;  %2634 = vadd.xlane.f32.xlu1 %v2633_v25  ;;  %v2779_v46 = vand.u32 2147483647, %v2771_v0  ;;  %v2780_v47 = vand.u32 2147483647, %v2772_v9  ;;  %v2614_v57 = vmul.f32 %v2606_v32, %v2606_v32 }
 0x3c9   :  { %v2781_v50 = vand.u32 2147483647, %v2773_v23  ;;  %v2740_v34 = vrot.slane %v4080_v7, %v3892_v31  ;;  %v4088_v36 = vmul.f32 %v3306_v52, %v2526_v27  ;;  %v2623_v40 = vmul.f32 %v2615_v18, %v3882_v26 }
 0x3ca   :  { %v2774_v60 = vsub.f32 %v4070_v63, %v2736_v2  ;;  %v2620_v26 = vmul.f32 %v2612_v29, %v3878_v24  ;;  %v2786_v10 = vsub.f32 1.0, %v2778_v30  ;;  %v2591_v13 = vsel %vm2331_vm3, %v2566_v41, %v4050_v45 }
 0x3cb   :  { %v2789_v55 = vsub.f32 1.0, %v2781_v50  ;;  %v2775_v56 = vsub.f32 %v4080_v7, %v2740_v34  ;;  %v2639_v62 = vsel %vm2446_vm0, %v2623_v40, 0.0  ;;  %v2744_v6 = vrot.slane %v4088_v36, %v3892_v31 }
 0x3cc   :  { %2640 = vadd.xlane.f32.xlu1 %v2639_v62  ;;  %v2831_v12 = vmul.f32 %v3035_v53, %v4095_v43  ;;  %v2787_v3 = vsub.f32 1.0, %v2779_v46  ;;  %v2788_v39 = vsub.f32 1.0, %v2780_v47  ;;  %v2782_v24 = vand.u32 2147483647, %v2774_v60 }
 0x3cd   :  { %v2783_v61 = vand.u32 2147483647, %v2775_v56  ;;  %v2797_v4 = vmax.f32 %v2789_v55, 0.0  ;;  %v2630_v14 = vsel %vm2446_vm0, %v2620_v26, 0.0  ;;  %v2622_v21 = vmul.f32 %v2614_v57, %v3866_v8 }
 0x3ce   :  { %v2793_v22 = vmax.f32 %v2785_v1, 0.0  ;;  %v2776_v49 = vsub.f32 %v4088_v36, %v2744_v6  ;;  %v2794_v0 = vmax.f32 %v2786_v10, 0.0  ;;  %v2825_v53 = vmul.f32 %v4042_v33, %v4050_v45 }
 0x3cf   :  { %v2791_v59 = vsub.f32 1.0, %v2783_v61  ;;  %v2837_v11 = vmul.f32 %v2829_v44, %v2797_v4  ;;  %v2574_v9 = vrot.slane %v4058_v48, %v3892_v31  ;;  %v3034_v18 = vsel %vm2476_vm1, 1.0, %v3388_v51 }
 0x3d0   :  { %2631 = vadd.xlane.f32.xlu1 %v2630_v14  ;;  %v2826_v8 = vmul.f32 %v4067_v15, %v2566_v41  ;;  %v2592_v23 = vsel %vm2333_vm4, %v4054_v38, %v2591_v13  ;;  %v2608_v25 = vsub.f32 %v4012_v54, %v4070_v63  ;;  %v2790_v33 = vsub.f32 1.0, %v2782_v24 }
 0x3d1   :  { %v2854_v52 = vsel %vm2841_vm2, %v2837_v11, 0.0  ;;  %v2799_v42 = vmax.f32 %v2791_v59, 0.0  ;;  %v2636_v45 = vsel %vm2446_vm0, %v2622_v21, 0.0  ;;  %v2833_v29 = vmul.f32 %v2825_v53, %v2793_v22 }
 0x3d2   :  { %2855 = vadd.xlane.f32.xlu0 %v2854_v52  ;;  %v2795_v30 = vmax.f32 %v2787_v3, 0.0  ;;  %v2784_v32 = vand.u32 2147483647, %v2776_v49  ;;  %v2834_v2 = vmul.f32 %v2826_v8, %v2794_v0  ;;  %v2796_v50 = vmax.f32 %v2788_v39, 0.0 }
 0x3d3   :  { %v2839_v27 = vmul.f32 %v2831_v12, %v2799_v42  ;;  %v2827_v15 = vmul.f32 %v4045_v35, %v4054_v38  ;;  %v2593_v34 = vsel %vm2335_vm5, %v2574_v9, %v2592_v23  ;;  %v2828_v54 = vmul.f32 %v4058_v48, %v2574_v9 }
 0x3d4   :  { %2637 = vadd.xlane.f32.xlu1 %v2636_v45  ;;  %v2582_v63 = vrot.slane %v3034_v18, %v3892_v31  ;;  %v3036_v40 = vsel %vm2478_vm10, 1.0, %v3388_v51  ;;  %v2616_v41 = vmul.f32 %v2608_v25, %v2608_v25  ;;  %v2609_v44 = vsub.f32 %v4014_v37, %v4080_v7 }
 0x3d5   :  { %v2860_v19 = vsel %vm2841_vm2, %v2839_v27, 0.0  ;;  %v2842_v1 = vsel %vm2841_vm2, %v2833_v29, 0.0  ;;  %v2835_v46 = vmul.f32 %v2827_v15, %v2795_v30  ;;  %v2792_v47 = vsub.f32 1.0, %v2784_v32 }
 0x3d6   :  { %2861 = vadd.xlane.f32.xlu0 %v2860_v19  ;;  %v2845_v35 = vsel %vm2841_vm2, %v2834_v2, 0.0  ;;  %v2836_v38 = vmul.f32 %v2828_v54, %v2796_v50  ;;  %v2798_v55 = vmax.f32 %v2790_v33, 0.0  ;;  %v2830_v48 = vmul.f32 %v3034_v18, %v2582_v63 }
 0x3d7   :  { %v2590_v56 = vrot.slane %v3036_v40, %v3892_v31  ;;  %v2594_v51 = vsel %vm2337_vm6, %v4073_v20, %v2593_v34  ;;  %v2617_v58 = vmul.f32 %v2609_v44, %v2609_v44  ;;  %v2848_v57 = vsel %vm2841_vm2, %v2835_v46, 0.0 }
 0x3d8   :  { %2843 = vadd.xlane.f32.xlu1 %v2842_v1  ;;  %v2624_v37 = vmul.f32 %v2616_v41, %v3870_v17  ;;  %v2610_v7 = vsub.f32 %v4024_v5, %v4088_v36  ;;  %v2851_v60 = vsel %vm2841_vm2, %v2836_v38, 0.0  ;;  %v2838_v62 = vmul.f32 %v2830_v48, %v2798_v55 }
 0x3d9   :  { %v2800_v26 = vmax.f32 %v2792_v47, 0.0  ;;  %v2832_v10 = vmul.f32 %v3036_v40, %v2590_v56  ;;  %v2595_v61 = vsel %vm2339_vm7, %v2582_v63, %v2594_v51  ;;  %v2625_v20 = vmul.f32 %v2617_v58, %v3886_v28 }
 0x3da   :  { %2846 = vadd.xlane.f32.xlu0 %v2845_v35  ;;  %v2642_v6 = vsel %vm2446_vm0, %v2624_v37, 0.0  ;;  %v2618_v4 = vmul.f32 %v2610_v7, %v2610_v7  ;;  %v2857_v17 = vsel %vm2841_vm2, %v2838_v62, 0.0  ;;  %v2596_v5 = vsel %vm2341_vm8, %v4095_v43, %v2595_v61 }
 0x3db   :  { %v2840_v13 = vmul.f32 %v2832_v10, %v2800_v26  ;;  %v2645_v36 = vsel %vm2446_vm0, %v2625_v20, 0.0  ;;  %v2597_v3 = vsel %vm2343_vm9, %v2590_v56, %v2596_v5 }
 0x3dc   :  { %2849 = vadd.xlane.f32.xlu1 %v2848_v57  ;;  %v2626_v39 = vmul.f32 %v2618_v4, %v3874_v16  ;;  %v2600_v28 = vsel %vm2599_vm11, %v2597_v3, 0.0 }
 0x3dd   :  { %v2863_v12 = vsel %vm2841_vm2, %v2840_v13, 0.0 }
 0x3de   :  { %2852 = vadd.xlane.f32.xlu0 %v2851_v60  ;;  %v2648_v59 = vsel %vm2446_vm0, %v2626_v39, 0.0  ;;  %vm2923_vm0 = vcmask 7168  }
 0x3e0   :  { %2643 = vadd.xlane.f32.xlu1 %v2642_v6 }
 0x3e2   :  { %2858 = vadd.xlane.f32.xlu0 %v2857_v17 }
 0x3e4   :  { %2646 = vadd.xlane.f32.xlu1 %v2645_v36 }
 0x3e6   :  { %2864 = vadd.xlane.f32.xlu0 %v2863_v12 }
 0x3e8   :  { %2601 = vadd.xlane.f32.xlu1 %v2600_v28 }
 0x3ea   :  { %2649 = vadd.xlane.f32.xlu0 %v2648_v59 }
 0x451   :  { %v2629_v43 = vpop.xlane.xlu0 %2628 }
 0x452   :  { %v2662_v33 = vrot.slane %v2629_v43, %v3892_v31 }
 0x455   :  { %v2635_v11 = vpop.xlane.xlu1 %2634 }
 0x456   :  { %v2670_v15 = vrot.slane %v2635_v11, %v3892_v31 }
 0x459   :  { %v2641_v24 = vpop.xlane.xlu1 %2640 }
 0x45a   :  { %v2678_v35 = vrot.slane %v2641_v24, %v3892_v31 }
 0x45d   :  { %v2632_v14 = vpop.xlane.xlu1 %2631 }
 0x45e   :  { %v2666_v23 = vrot.slane %v2632_v14, %v3892_v31 }
 0x45f   :  { %v2856_v21 = vpop.xlane.xlu0 %2855 }
 0x460   :  { %v2893_v30 = vrot.slane %v2856_v21, %v3892_v31  ;;  %v2691_v19 = vsel %vm2331_vm3, %v2666_v23, %v2662_v33 }
 0x461   :  { %v2638_v22 = vpop.xlane.xlu1 %2637  ;;  %v2692_v40 = vsel %vm2333_vm4, %v2670_v15, %v2691_v19 }
 0x462   :  { %v2674_v2 = vrot.slane %v2638_v22, %v3892_v31 }
 0x463   :  { %v2862_v49 = vpop.xlane.xlu0 %2861 }
 0x464   :  { %v2901_v41 = vrot.slane %v2862_v49, %v3892_v31  ;;  %v2693_v1 = vsel %vm2335_vm5, %v2674_v2, %v2692_v40 }
 0x465   :  { %v2844_v52 = vpop.xlane.xlu1 %2843  ;;  %v2694_v56 = vsel %vm2337_vm6, %v2678_v35, %v2693_v1 }
 0x466   :  { %v2877_v0 = vrot.slane %v2844_v52, %v3892_v31 }
 0x467   :  { %v2847_v42 = vpop.xlane.xlu0 %2846 }
 0x468   :  { %v2881_v16 = vrot.slane %v2847_v42, %v3892_v31 }
 0x469   :  { %v2850_v9 = vpop.xlane.xlu1 %2849 }
 0x46a   :  { %v2906_v53 = vsel %vm2331_vm3, %v2881_v16, %v2877_v0  ;;  %v2885_v18 = vrot.slane %v2850_v9, %v3892_v31  ;;  %vm2925_vm3 = vcmask 15360  }
 0x46b   :  { %v2853_v8 = vpop.xlane.xlu0 %2852 }
 0x46c   :  { %v2889_v25 = vrot.slane %v2853_v8, %v3892_v31  ;;  %v2907_v27 = vsel %vm2333_vm4, %v2885_v18, %v2906_v53 }
 0x46d   :  { %v2644_v29 = vpop.xlane.xlu1 %2643 }
 0x46e   :  { %v2908_v45 = vsel %vm2335_vm5, %v2889_v25, %v2907_v27  ;;  %v2682_v46 = vrot.slane %v2644_v29, %v3892_v31 }
 0x46f   :  { %v2859_v32 = vpop.xlane.xlu0 %2858  ;;  %v2909_v34 = vsel %vm2337_vm6, %v2893_v30, %v2908_v45 }
 0x470   :  { %v2897_v50 = vrot.slane %v2859_v32, %v3892_v31  ;;  %v2695_v57 = vsel %vm2339_vm7, %v2682_v46, %v2694_v56 }
 0x471   :  { %v2647_v63 = vpop.xlane.xlu1 %2646 }
 0x472   :  { %v2910_v54 = vsel %vm2339_vm7, %v2897_v50, %v2909_v34  ;;  %v2686_v38 = vrot.slane %v2647_v63, %v3892_v31 }
 0x473   :  { %v2865_v44 = vpop.xlane.xlu0 %2864  ;;  %v2911_v55 = vsel %vm2341_vm8, %v2901_v41, %v2910_v54 }
 0x474   :  { %v2905_v47 = vrot.slane %v2865_v44, %v3892_v31  ;;  %v2696_v7 = vsel %vm2341_vm8, %v2686_v38, %v2695_v57 }
 0x475   :  { %v2602_v26 = vpop.xlane.xlu1 %2601 }
 0x476   :  { %v2912_v48 = vsel %vm2343_vm9, %v2905_v47, %v2911_v55  ;;  %v3037_v10 = vadd.f32 -1.0, %v2602_v26  ;;  %v2702_v6 = vadd.f32 0.0001, %v2602_v26 }
 0x477   :  { %v2650_v51 = vpop.xlane.xlu0 %2649  ;;  %v2914_v58 = vsel %vm2599_vm11, %v2912_v48, 0.0 }
 0x478   :  { %v2690_v37 = vrot.slane %v2650_v51, %v3892_v31  ;;  %2915 = vadd.xlane.f32.xlu0 %v2914_v58  ;;  %v2919_v61 = vmul.f32 %v3037_v10, %v2602_v26  ;;  %3307 = vrcp.f32 %v2702_v6 }
 0x47a   :  { %v2697_v60 = vsel %vm2343_vm9, %v2690_v37, %v2696_v7  ;;  %v2920_v20 = vadd.f32 0.0001, %v2919_v61 }
 0x47b   :  { %v2699_v62 = vsel %vm2599_vm11, %v2697_v60, 0.0 }
 0x47c   :  { %2700 = vadd.xlane.f32.xlu1 %v2699_v62  ;;  %3309 = vrcp.f32 %v2920_v20 }
 0x482   :  { %v3308_v13 = vpop.eup %3307 }
 0x486   :  { %v3310_v5 = vpop.eup %3309 }
 0x505   :  { %v2916_v4 = vpop.xlane.xlu0 %2915 }
 0x506   :  { %v2917_v17 = vsub.f32 %v2916_v4, %v2602_v26 }
 0x508   :  { %v2922_v36 = vmul.f32 %v3310_v5, %v2917_v17 }
 0x509   :  { %v2701_v31 = vpop.xlane.xlu1 %2700 }
 0x50a   :  { %v2704_v12 = vmul.f32 %v3308_v13, %v2701_v31 }
 0x50c   :  { %v2924_v3 = vsel %vm2923_vm0, %v2704_v12, %v2922_v36 }
 0x50d   :  { %2926 = vst.msk [vmem:[%s4196_s3] sm:$0xff] %vm2925_vm3, %v2924_v3 }
 0x50e   :  { %2931 = vsyncpa [#allocation3], 1 }
 0x50f   :  { %2932 = vsyncpa [#allocation5], 1 }

</bundles_post_ra>
